<compile_context>
chip_gen: v7x
topology: tpu7x:2x2x1
jax: 0.10.0
libtpu: 0.0.40
codegen_flags: <defaults>
</compile_context>

<pallas_src>
import functools

import jax
import jax.numpy as jnp
from jax import lax
from jax.experimental import pallas as pl
from jax.experimental.pallas import tpu as pltpu


# ----------------------------------- kernel -----------------------------------

def _bilstm_kernel(*refs, layers: int, size: int, seq_len: int, batch: int):
    """Fused bidirectional multi-layer LSTM forward.

    refs = (x_ref,                                  # (T*B, size)
            wih_0, whh_0, b_0, ..., wih_{L-1}, whh_{L-1}, b_{L-1},
            out_ref,                                # (T*B, size)  fwd+bwd+input
            hn_ref, cn_ref,                         # (2L*B, size)
            seq_scr)                                # VMEM f32 (T*B, 2*size)

    Combined-weight layout (built in pack_params):
      gate columns along 8H axis: [i_f|i_b | f_f|f_b | g_f|g_b | o_f|o_b],
      each block H wide. whh is block-diagonal over {fwd rows 0:H, bwd rows H:2H}.
      Hidden/cell state is (B, 2H) = [fwd H | bwd H].
    """
    H = size
    T = seq_len
    B = batch
    H2 = 2 * H
    H8 = 8 * H

    x_ref = refs[0]
    w_refs = refs[1:1 + 3 * layers]
    out_ref = refs[1 + 3 * layers]
    hn_ref = refs[2 + 3 * layers]
    cn_ref = refs[3 + 3 * layers]
    seq_scr = refs[4 + 3 * layers]

    # Lane masks (computed once, hoisted out of all loops).
    lane = lax.broadcasted_iota(jnp.int32, (B, H8), 1)
    is_bwd = (lane % H2) >= H                     # columns of the backward direction
    is_g = (lane >= 4 * H) & (lane < 6 * H)       # 'g' gate block -> tanh

    x0 = x_ref[...].astype(jnp.float32)           # (T*B, H)
    layer_in = x0

    for l in range(layers):
        wih = w_refs[3 * l][...].astype(jnp.float32)      # (D_in, 8H)
        whh = w_refs[3 * l + 1][...].astype(jnp.float32)  # (2H, 8H) block-diagonal
        b = w_refs[3 * l + 2][...].astype(jnp.float32)    # (1, 8H)

        # Hoisted input projection: all T timesteps, both directions, one matmul.
        gx = jnp.dot(layer_in, wih, preferred_element_type=jnp.float32) + b   # (T*B, 8H)

        # State lives in vregs across the unrolled time loop.
        h = jnp.zeros((B, H2), jnp.float32)
        c = jnp.zeros((B, H2), jnp.float32)

        for t in range(T):                        # fully unrolled, static indices
            r = T - 1 - t                         # reversed time index (bwd direction)
            gx_t = jnp.where(is_bwd,
                             gx[r * B:(r + 1) * B, :],
                             gx[t * B:(t + 1) * B, :])
            gates = gx_t + jnp.dot(h, whh, preferred_element_type=jnp.float32)

            # Full-vreg EUP passes + one lane-mask select instead of 8 narrow slices.
            sig = jax.nn.sigmoid(gates)
            tah = jnp.tanh(gates)
            act = jnp.where(is_g, tah, sig)

            i_g = act[:, 0:H2]
            f_g = act[:, H2:2 * H2]
            g_g = act[:, 2 * H2:3 * H2]
            o_g = act[:, 3 * H2:4 * H2]

            c = f_g * c + i_g * g_g
            h = o_g * jnp.tanh(c)

            # fwd hidden belongs to time t, bwd hidden to time r.
            seq_scr[pl.ds(t * B, B), pl.ds(0, H)] = h[:, 0:H]
            seq_scr[pl.ds(r * B, B), pl.ds(H, H)] = h[:, H:H2]

        # Final states (fwd processed time T-1 last, bwd processed time 0 last).
        hn_ref[pl.ds(2 * l * B, B), :] = h[:, 0:H].astype(hn_ref.dtype)
        hn_ref[pl.ds((2 * l + 1) * B, B), :] = h[:, H:H2].astype(hn_ref.dtype)
        cn_ref[pl.ds(2 * l * B, B), :] = c[:, 0:H].astype(cn_ref.dtype)
        cn_ref[pl.ds((2 * l + 1) * B, B), :] = c[:, H:H2].astype(cn_ref.dtype)

        layer_in = seq_scr[...]                   # (T*B, 2H) -> next layer input

    # Fused skip connection: fwd + bwd + inputs.
    out_ref[...] = (layer_in[:, 0:H] + layer_in[:, H:H2] + x0).astype(out_ref.dtype)


# ----------------------------------- wrapper -----------------------------------

def bidirectional_lstm_forward(inputs, packed_params, size: int):
    """Matches BidrectionalLSTM.forward: (fwd + bwd + inputs, hn, cn)."""
    T, B, D = inputs.shape
    assert D == size, "skip connection requires input size == hidden size"
    layers = len(packed_params)
    H = size
    vmem = pltpu.MemorySpace.VMEM

    flat_w = []
    for (wih, whh, b) in packed_params:
        flat_w += [wih, whh, b]

    kernel = functools.partial(_bilstm_kernel, layers=layers, size=size,
                               seq_len=T, batch=B)

    out2, hn, cn = pl.pallas_call(
        kernel,
        out_shape=(
            jax.ShapeDtypeStruct((T * B, H), inputs.dtype),
            jax.ShapeDtypeStruct((2 * layers * B, H), inputs.dtype),
            jax.ShapeDtypeStruct((2 * layers * B, H), inputs.dtype),
        ),
        in_specs=[pl.BlockSpec(memory_space=vmem)] * (1 + 3 * layers),
        out_specs=(pl.BlockSpec(memory_space=vmem),) * 3,
        scratch_shapes=[pltpu.VMEM((T * B, 2 * H), jnp.float32)],
    )(inputs.reshape(T * B, D), *flat_w)

    return (out2.reshape(T, B, H),
            hn.reshape(2 * layers, B, H),
            cn.reshape(2 * layers, B, H))


# ------------------------------- parameter helpers -------------------------------

def init_raw_params(key, size: int, layers: int, dtype=jnp.float32):
    """nn.LSTM-style raw params: per layer, per direction (w_ih, w_hh, b_ih, b_hh)."""
    bound = 1.0 / float(size) ** 0.5
    params = []
    for layer in range(layers):
        d_in = size if layer == 0 else 2 * size
        layer_p = []
        for _direction in range(2):
            key, k1, k2, k3, k4 = jax.random.split(key, 5)
            w_ih = jax.random.uniform(k1, (4 * size, d_in), dtype, -bound, bound)
            w_hh = jax.random.uniform(k2, (4 * size, size), dtype, -bound, bound)
            b_ih = jax.random.uniform(k3, (4 * size,), dtype, -bound, bound)
            b_hh = jax.random.uniform(k4, (4 * size,), dtype, -bound, bound)
            layer_p.append((w_ih, w_hh, b_ih, b_hh))
        params.append(layer_p)
    return params


def pack_params(raw_params, size: int):
    """Build per-layer combined weights for the fused kernel.

    Gate-column layout along 8H: [i_f|i_b|f_f|f_b|g_f|g_b|o_f|o_b]; whh is
    block-diagonal so one (B,2H)x(2H,8H) matmul serves both directions.
    """
    H = size
    packed = []
    for layer_p in raw_params:
        (wih_f, whh_f, bih_f, bhh_f), (wih_b, whh_b, bih_b, bhh_b) = layer_p
        wih_fT, wih_bT = wih_f.T, wih_b.T          # (d_in, 4H)
        whh_fT, whh_bT = whh_f.T, whh_b.T          # (H, 4H)
        b_f = bih_f + bhh_f
        b_b = bih_b + bhh_b

        wih_cols, b_cols = [], []
        for g in range(4):
            wih_cols.append(wih_fT[:, g * H:(g + 1) * H])
            wih_cols.append(wih_bT[:, g * H:(g + 1) * H])
            b_cols.append(b_f[g * H:(g + 1) * H])
            b_cols.append(b_b[g * H:(g + 1) * H])
        wih_comb = jnp.concatenate(wih_cols, axis=1)            # (d_in, 8H)
        b_comb = jnp.concatenate(b_cols)[None, :]               # (1, 8H)

        whh_comb = jnp.zeros((2 * H, 8 * H), wih_f.dtype)
        for g in range(4):
            whh_comb = whh_comb.at[0:H, 2 * g * H:(2 * g + 1) * H].set(
                whh_fT[:, g * H:(g + 1) * H])
            whh_comb = whh_comb.at[H:2 * H, (2 * g + 1) * H:(2 * g + 2) * H].set(
                whh_bT[:, g * H:(g + 1) * H])
        packed.append((wih_comb, whh_comb, b_comb))
    return packed


# ------------------------- pure-JAX reference (for checking) -------------------------

def _ref_direction(x, w_ih, w_hh, b_ih, b_hh, reverse):
    T, B, _ = x.shape
    H = w_hh.shape[1]
    xs = x[::-1] if reverse else x
    wihT, whhT = w_ih.T, w_hh.T
    b = (b_ih + b_hh)[None, :]

    def step(carry, x_t):
        h, c = carry
        gates = x_t @ wihT + h @ whhT + b
        i = jax.nn.sigmoid(gates[:, :H])
        f = jax.nn.sigmoid(gates[:, H:2 * H])
        g = jnp.tanh(gates[:, 2 * H:3 * H])
        o = jax.nn.sigmoid(gates[:, 3 * H:])
        c = f * c + i * g
        h = o * jnp.tanh(c)
        return (h, c), h

    (h, c), ys = lax.scan(step,
                          (jnp.zeros((B, H), x.dtype), jnp.zeros((B, H), x.dtype)),
                          xs)
    ys = ys[::-1] if reverse else ys
    return ys, h, c


def _ref_forward(inputs, raw_params, size):
    layer_in = inputs
    hns, cns = [], []
    for layer_p in raw_params:
        dir_outs = []
        for direction, (w_ih, w_hh, b_ih, b_hh) in enumerate(layer_p):
            out, hn, cn = _ref_direction(layer_in, w_ih, w_hh, b_ih, b_hh,
                                         direction == 1)
            dir_outs.append(out)
            hns.append(hn)
            cns.append(cn)
        layer_in = jnp.concatenate(dir_outs, axis=-1)
    output = layer_in[:, :, :size] + layer_in[:, :, size:] + inputs
    return output, jnp.stack(hns, 0), jnp.stack(cns, 0)


# --------------------------------------- main ---------------------------------------

if __name__ == "__main__":
    size = 32      # input == hidden size (constraint of the module)
    layers = 2
    seq_len = 8
    batch = 1      # module assumes batch_size = 1

    key = jax.random.PRNGKey(0)
    key, pkey, xkey = jax.random.split(key, 3)
    raw_params = init_raw_params(pkey, size, layers)
    packed_params = pack_params(raw_params, size)
    inputs = jax.random.normal(xkey, (seq_len, batch, size), jnp.float32)

    output, hn, cn = bidirectional_lstm_forward(inputs, packed_params, size)
    jax.block_until_ready((output, hn, cn))

    ref_out, ref_hn, ref_cn = _ref_forward(inputs, raw_params, size)
    assert output.shape == (seq_len, batch, size)
    assert hn.shape == (layers * 2, batch, size)
    assert cn.shape == (layers * 2, batch, size)
    assert jnp.allclose(output, ref_out, rtol=1e-4, atol=1e-4)
    assert jnp.allclose(hn, ref_hn, rtol=1e-4, atol=1e-4)
    assert jnp.allclose(cn, ref_cn, rtol=1e-4, atol=1e-4)

    print("KERNEL_OK")
</pallas_src>

<mosaic_0001>
module attributes {stable_mosaic.version = 11 : i64} {
  func.func @_bilstm_kernel(%arg0: memref<8x32xf32, #tpu.memory_space<vmem>>, %arg1: memref<32x256xf32, #tpu.memory_space<vmem>>, %arg2: memref<64x256xf32, #tpu.memory_space<vmem>>, %arg3: memref<1x256xf32, #tpu.memory_space<vmem>>, %arg4: memref<64x256xf32, #tpu.memory_space<vmem>>, %arg5: memref<64x256xf32, #tpu.memory_space<vmem>>, %arg6: memref<1x256xf32, #tpu.memory_space<vmem>>, %arg7: memref<8x32xf32, #tpu.memory_space<vmem>>, %arg8: memref<4x32xf32, #tpu.memory_space<vmem>>, %arg9: memref<4x32xf32, #tpu.memory_space<vmem>>, %arg10: memref<8x64xf32, #tpu.memory_space<vmem>>) attributes {dimension_semantics = [], scalar_prefetch = 0 : i64, scratch_operands = 1 : i64, tpu.core_type = #tpu.core_type<tc>} {
    %0 = tpu.iota {dimensions = array<i32: 1>} : vector<1x256xi32>
    %c64_i32 = arith.constant 64 : i32
    %c0_i32 = arith.constant 0 : i32
    %1 = arith.cmpi eq, %c64_i32, %c0_i32 : i32
    %c1_i32 = arith.constant 1 : i32
    %2 = arith.select %1, %c1_i32, %c64_i32 : i32
    %3 = vector.broadcast %2 : i32 to vector<1x256xi32>
    %4 = arith.remsi %0, %3 : vector<1x256xi32>
    %c0_i32_0 = arith.constant 0 : i32
    %5 = vector.broadcast %c0_i32_0 : i32 to vector<1x256xi32>
    %6 = arith.cmpi ne, %4, %5 : vector<1x256xi32>
    %c0_i32_1 = arith.constant 0 : i32
    %7 = vector.broadcast %c0_i32_1 : i32 to vector<1x256xi32>
    %8 = arith.cmpi slt, %4, %7 : vector<1x256xi32>
    %c0_i32_2 = arith.constant 0 : i32
    %9 = arith.cmpi slt, %2, %c0_i32_2 : i32
    %10 = vector.broadcast %9 : i1 to vector<1x256xi1>
    %11 = vector.broadcast %10 : vector<1x256xi1> to vector<1x256xi1>
    %12 = arith.xori %8, %11 : vector<1x256xi1>
    %13 = arith.andi %12, %6 : vector<1x256xi1>
    %14 = vector.broadcast %2 : i32 to vector<1x256xi32>
    %15 = arith.addi %4, %14 : vector<1x256xi32>
    %16 = arith.select %13, %15, %4 : vector<1x256xi1>, vector<1x256xi32>
    %c32_i32 = arith.constant 32 : i32
    %17 = vector.broadcast %c32_i32 : i32 to vector<1x256xi32>
    %18 = arith.cmpi sge, %16, %17 : vector<1x256xi32>
    %c128_i32 = arith.constant 128 : i32
    %19 = vector.broadcast %c128_i32 : i32 to vector<1x256xi32>
    %20 = arith.cmpi sge, %0, %19 : vector<1x256xi32>
    %c192_i32 = arith.constant 192 : i32
    %21 = vector.broadcast %c192_i32 : i32 to vector<1x256xi32>
    %22 = arith.cmpi slt, %0, %21 : vector<1x256xi32>
    %23 = arith.andi %20, %22 : vector<1x256xi1>
    %c0 = arith.constant 0 : index
    %c0_3 = arith.constant 0 : index
    %24 = vector.load %arg0[%c0, %c0_3] : memref<8x32xf32, #tpu.memory_space<vmem>>, vector<8x32xf32>
    %c0_4 = arith.constant 0 : index
    %c0_5 = arith.constant 0 : index
    %25 = vector.load %arg1[%c0_4, %c0_5] : memref<32x256xf32, #tpu.memory_space<vmem>>, vector<32x256xf32>
    %c0_6 = arith.constant 0 : index
    %c0_7 = arith.constant 0 : index
    %26 = vector.load %arg2[%c0_6, %c0_7] : memref<64x256xf32, #tpu.memory_space<vmem>>, vector<64x256xf32>
    %c0_8 = arith.constant 0 : index
    %c0_9 = arith.constant 0 : index
    %27 = vector.load %arg3[%c0_8, %c0_9] : memref<1x256xf32, #tpu.memory_space<vmem>>, vector<1x256xf32>
    %cst = arith.constant dense<0.000000e+00> : vector<8x256xf32>
    %28 = tpu.matmul %24, %25, %cst {dimension_numbers = #tpu.dot_dimension_numbers<[1], [0], [0], [1], [0, 0, 1, 1], [], []>} : vector<8x32xf32>, vector<32x256xf32>, vector<8x256xf32> -> vector<8x256xf32>
    %29 = vector.broadcast %27 : vector<1x256xf32> to vector<8x256xf32>
    %30 = arith.addf %28, %29 : vector<8x256xf32>
    %cst_10 = arith.constant 0.000000e+00 : f32
    %31 = vector.broadcast %cst_10 : f32 to vector<1x64xf32>
    %cst_11 = arith.constant 0.000000e+00 : f32
    %32 = vector.broadcast %cst_11 : f32 to vector<1x64xf32>
    %33 = vector.extract_strided_slice %30 {offsets = [7, 0], sizes = [1, 256], strides = [1, 1]} : vector<8x256xf32> to vector<1x256xf32>
    %34 = vector.extract_strided_slice %30 {offsets = [0, 0], sizes = [1, 256], strides = [1, 1]} : vector<8x256xf32> to vector<1x256xf32>
    %35 = arith.select %18, %33, %34 : vector<1x256xi1>, vector<1x256xf32>
    %cst_12 = arith.constant dense<0.000000e+00> : vector<1x256xf32>
    %36 = tpu.matmul %31, %26, %cst_12 {dimension_numbers = #tpu.dot_dimension_numbers<[1], [0], [0], [1], [0, 0, 1, 1], [], []>} : vector<1x64xf32>, vector<64x256xf32>, vector<1x256xf32> -> vector<1x256xf32>
    %37 = arith.addf %35, %36 : vector<1x256xf32>
    %38 = arith.negf %37 : vector<1x256xf32>
    %39 = math.exp %38 : vector<1x256xf32>
    %cst_13 = arith.constant 1.000000e+00 : f32
    %40 = vector.broadcast %cst_13 : f32 to vector<1x256xf32>
    %41 = arith.addf %40, %39 : vector<1x256xf32>
    %42 = arith.divf %40, %41 : vector<1x256xf32>
    %43 = math.tanh %37 : vector<1x256xf32>
    %44 = arith.select %23, %43, %42 : vector<1x256xi1>, vector<1x256xf32>
    %45 = vector.extract_strided_slice %44 {offsets = [0, 0], sizes = [1, 64], strides = [1, 1]} : vector<1x256xf32> to vector<1x64xf32>
    %46 = vector.extract_strided_slice %44 {offsets = [0, 64], sizes = [1, 64], strides = [1, 1]} : vector<1x256xf32> to vector<1x64xf32>
    %47 = vector.extract_strided_slice %44 {offsets = [0, 128], sizes = [1, 64], strides = [1, 1]} : vector<1x256xf32> to vector<1x64xf32>
    %48 = vector.extract_strided_slice %44 {offsets = [0, 192], sizes = [1, 64], strides = [1, 1]} : vector<1x256xf32> to vector<1x64xf32>
    %49 = arith.mulf %46, %32 : vector<1x64xf32>
    %50 = arith.mulf %45, %47 : vector<1x64xf32>
    %51 = arith.addf %49, %50 : vector<1x64xf32>
    %52 = math.tanh %51 : vector<1x64xf32>
    %53 = arith.mulf %48, %52 : vector<1x64xf32>
    %54 = vector.extract_strided_slice %53 {offsets = [0, 0], sizes = [1, 32], strides = [1, 1]} : vector<1x64xf32> to vector<1x32xf32>
    %c0_14 = arith.constant 0 : index
    %c0_15 = arith.constant 0 : index
    %55 = vector.load %arg10[%c0_14, %c0_15] : memref<8x64xf32, #tpu.memory_space<vmem>>, vector<1x32xf32>
    tpu.vector_store %arg10[%c0_14, %c0_15], %54 {strides = array<i32>} : memref<8x64xf32, #tpu.memory_space<vmem>>, vector<1x32xf32>,
    %56 = vector.extract_strided_slice %53 {offsets = [0, 32], sizes = [1, 32], strides = [1, 1]} : vector<1x64xf32> to vector<1x32xf32>
    %c7 = arith.constant 7 : index
    %c32 = arith.constant 32 : index
    %57 = vector.load %arg10[%c7, %c32] : memref<8x64xf32, #tpu.memory_space<vmem>>, vector<1x32xf32>
    tpu.vector_store %arg10[%c7, %c32], %56 {strides = array<i32>} : memref<8x64xf32, #tpu.memory_space<vmem>>, vector<1x32xf32>,
    %58 = vector.extract_strided_slice %30 {offsets = [6, 0], sizes = [1, 256], strides = [1, 1]} : vector<8x256xf32> to vector<1x256xf32>
    %59 = vector.extract_strided_slice %30 {offsets = [1, 0], sizes = [1, 256], strides = [1, 1]} : vector<8x256xf32> to vector<1x256xf32>
    %60 = arith.select %18, %58, %59 : vector<1x256xi1>, vector<1x256xf32>
    %cst_16 = arith.constant dense<0.000000e+00> : vector<1x256xf32>
    %61 = tpu.matmul %53, %26, %cst_16 {dimension_numbers = #tpu.dot_dimension_numbers<[1], [0], [0], [1], [0, 0, 1, 1], [], []>} : vector<1x64xf32>, vector<64x256xf32>, vector<1x256xf32> -> vector<1x256xf32>
    %62 = arith.addf %60, %61 : vector<1x256xf32>
    %63 = arith.negf %62 : vector<1x256xf32>
    %64 = math.exp %63 : vector<1x256xf32>
    %cst_17 = arith.constant 1.000000e+00 : f32
    %65 = vector.broadcast %cst_17 : f32 to vector<1x256xf32>
    %66 = arith.addf %65, %64 : vector<1x256xf32>
    %67 = arith.divf %65, %66 : vector<1x256xf32>
    %68 = math.tanh %62 : vector<1x256xf32>
    %69 = arith.select %23, %68, %67 : vector<1x256xi1>, vector<1x256xf32>
    %70 = vector.extract_strided_slice %69 {offsets = [0, 0], sizes = [1, 64], strides = [1, 1]} : vector<1x256xf32> to vector<1x64xf32>
    %71 = vector.extract_strided_slice %69 {offsets = [0, 64], sizes = [1, 64], strides = [1, 1]} : vector<1x256xf32> to vector<1x64xf32>
    %72 = vector.extract_strided_slice %69 {offsets = [0, 128], sizes = [1, 64], strides = [1, 1]} : vector<1x256xf32> to vector<1x64xf32>
    %73 = vector.extract_strided_slice %69 {offsets = [0, 192], sizes = [1, 64], strides = [1, 1]} : vector<1x256xf32> to vector<1x64xf32>
    %74 = arith.mulf %71, %51 : vector<1x64xf32>
    %75 = arith.mulf %70, %72 : vector<1x64xf32>
    %76 = arith.addf %74, %75 : vector<1x64xf32>
    %77 = math.tanh %76 : vector<1x64xf32>
    %78 = arith.mulf %73, %77 : vector<1x64xf32>
    %79 = vector.extract_strided_slice %78 {offsets = [0, 0], sizes = [1, 32], strides = [1, 1]} : vector<1x64xf32> to vector<1x32xf32>
    %c1 = arith.constant 1 : index
    %c0_18 = arith.constant 0 : index
    %80 = vector.load %arg10[%c1, %c0_18] : memref<8x64xf32, #tpu.memory_space<vmem>>, vector<1x32xf32>
    tpu.vector_store %arg10[%c1, %c0_18], %79 {strides = array<i32>} : memref<8x64xf32, #tpu.memory_space<vmem>>, vector<1x32xf32>,
    %81 = vector.extract_strided_slice %78 {offsets = [0, 32], sizes = [1, 32], strides = [1, 1]} : vector<1x64xf32> to vector<1x32xf32>
    %c6 = arith.constant 6 : index
    %c32_19 = arith.constant 32 : index
    %82 = vector.load %arg10[%c6, %c32_19] : memref<8x64xf32, #tpu.memory_space<vmem>>, vector<1x32xf32>
    tpu.vector_store %arg10[%c6, %c32_19], %81 {strides = array<i32>} : memref<8x64xf32, #tpu.memory_space<vmem>>, vector<1x32xf32>,
    %83 = vector.extract_strided_slice %30 {offsets = [5, 0], sizes = [1, 256], strides = [1, 1]} : vector<8x256xf32> to vector<1x256xf32>
    %84 = vector.extract_strided_slice %30 {offsets = [2, 0], sizes = [1, 256], strides = [1, 1]} : vector<8x256xf32> to vector<1x256xf32>
    %85 = arith.select %18, %83, %84 : vector<1x256xi1>, vector<1x256xf32>
    %cst_20 = arith.constant dense<0.000000e+00> : vector<1x256xf32>
    %86 = tpu.matmul %78, %26, %cst_20 {dimension_numbers = #tpu.dot_dimension_numbers<[1], [0], [0], [1], [0, 0, 1, 1], [], []>} : vector<1x64xf32>, vector<64x256xf32>, vector<1x256xf32> -> vector<1x256xf32>
    %87 = arith.addf %85, %86 : vector<1x256xf32>
    %88 = arith.negf %87 : vector<1x256xf32>
    %89 = math.exp %88 : vector<1x256xf32>
    %cst_21 = arith.constant 1.000000e+00 : f32
    %90 = vector.broadcast %cst_21 : f32 to vector<1x256xf32>
    %91 = arith.addf %90, %89 : vector<1x256xf32>
    %92 = arith.divf %90, %91 : vector<1x256xf32>
    %93 = math.tanh %87 : vector<1x256xf32>
    %94 = arith.select %23, %93, %92 : vector<1x256xi1>, vector<1x256xf32>
    %95 = vector.extract_strided_slice %94 {offsets = [0, 0], sizes = [1, 64], strides = [1, 1]} : vector<1x256xf32> to vector<1x64xf32>
    %96 = vector.extract_strided_slice %94 {offsets = [0, 64], sizes = [1, 64], strides = [1, 1]} : vector<1x256xf32> to vector<1x64xf32>
    %97 = vector.extract_strided_slice %94 {offsets = [0, 128], sizes = [1, 64], strides = [1, 1]} : vector<1x256xf32> to vector<1x64xf32>
    %98 = vector.extract_strided_slice %94 {offsets = [0, 192], sizes = [1, 64], strides = [1, 1]} : vector<1x256xf32> to vector<1x64xf32>
    %99 = arith.mulf %96, %76 : vector<1x64xf32>
    %100 = arith.mulf %95, %97 : vector<1x64xf32>
    %101 = arith.addf %99, %100 : vector<1x64xf32>
    %102 = math.tanh %101 : vector<1x64xf32>
    %103 = arith.mulf %98, %102 : vector<1x64xf32>
    %104 = vector.extract_strided_slice %103 {offsets = [0, 0], sizes = [1, 32], strides = [1, 1]} : vector<1x64xf32> to vector<1x32xf32>
    %c2 = arith.constant 2 : index
    %c0_22 = arith.constant 0 : index
    %105 = vector.load %arg10[%c2, %c0_22] : memref<8x64xf32, #tpu.memory_space<vmem>>, vector<1x32xf32>
    tpu.vector_store %arg10[%c2, %c0_22], %104 {strides = array<i32>} : memref<8x64xf32, #tpu.memory_space<vmem>>, vector<1x32xf32>,
    %106 = vector.extract_strided_slice %103 {offsets = [0, 32], sizes = [1, 32], strides = [1, 1]} : vector<1x64xf32> to vector<1x32xf32>
    %c5 = arith.constant 5 : index
    %c32_23 = arith.constant 32 : index
    %107 = vector.load %arg10[%c5, %c32_23] : memref<8x64xf32, #tpu.memory_space<vmem>>, vector<1x32xf32>
    tpu.vector_store %arg10[%c5, %c32_23], %106 {strides = array<i32>} : memref<8x64xf32, #tpu.memory_space<vmem>>, vector<1x32xf32>,
    %108 = vector.extract_strided_slice %30 {offsets = [4, 0], sizes = [1, 256], strides = [1, 1]} : vector<8x256xf32> to vector<1x256xf32>
    %109 = vector.extract_strided_slice %30 {offsets = [3, 0], sizes = [1, 256], strides = [1, 1]} : vector<8x256xf32> to vector<1x256xf32>
    %110 = arith.select %18, %108, %109 : vector<1x256xi1>, vector<1x256xf32>
    %cst_24 = arith.constant dense<0.000000e+00> : vector<1x256xf32>
    %111 = tpu.matmul %103, %26, %cst_24 {dimension_numbers = #tpu.dot_dimension_numbers<[1], [0], [0], [1], [0, 0, 1, 1], [], []>} : vector<1x64xf32>, vector<64x256xf32>, vector<1x256xf32> -> vector<1x256xf32>
    %112 = arith.addf %110, %111 : vector<1x256xf32>
    %113 = arith.negf %112 : vector<1x256xf32>
    %114 = math.exp %113 : vector<1x256xf32>
    %cst_25 = arith.constant 1.000000e+00 : f32
    %115 = vector.broadcast %cst_25 : f32 to vector<1x256xf32>
    %116 = arith.addf %115, %114 : vector<1x256xf32>
    %117 = arith.divf %115, %116 : vector<1x256xf32>
    %118 = math.tanh %112 : vector<1x256xf32>
    %119 = arith.select %23, %118, %117 : vector<1x256xi1>, vector<1x256xf32>
    %120 = vector.extract_strided_slice %119 {offsets = [0, 0], sizes = [1, 64], strides = [1, 1]} : vector<1x256xf32> to vector<1x64xf32>
    %121 = vector.extract_strided_slice %119 {offsets = [0, 64], sizes = [1, 64], strides = [1, 1]} : vector<1x256xf32> to vector<1x64xf32>
    %122 = vector.extract_strided_slice %119 {offsets = [0, 128], sizes = [1, 64], strides = [1, 1]} : vector<1x256xf32> to vector<1x64xf32>
    %123 = vector.extract_strided_slice %119 {offsets = [0, 192], sizes = [1, 64], strides = [1, 1]} : vector<1x256xf32> to vector<1x64xf32>
    %124 = arith.mulf %121, %101 : vector<1x64xf32>
    %125 = arith.mulf %120, %122 : vector<1x64xf32>
    %126 = arith.addf %124, %125 : vector<1x64xf32>
    %127 = math.tanh %126 : vector<1x64xf32>
    %128 = arith.mulf %123, %127 : vector<1x64xf32>
    %129 = vector.extract_strided_slice %128 {offsets = [0, 0], sizes = [1, 32], strides = [1, 1]} : vector<1x64xf32> to vector<1x32xf32>
    %c3 = arith.constant 3 : index
    %c0_26 = arith.constant 0 : index
    %130 = vector.load %arg10[%c3, %c0_26] : memref<8x64xf32, #tpu.memory_space<vmem>>, vector<1x32xf32>
    tpu.vector_store %arg10[%c3, %c0_26], %129 {strides = array<i32>} : memref<8x64xf32, #tpu.memory_space<vmem>>, vector<1x32xf32>,
    %131 = vector.extract_strided_slice %128 {offsets = [0, 32], sizes = [1, 32], strides = [1, 1]} : vector<1x64xf32> to vector<1x32xf32>
    %c4 = arith.constant 4 : index
    %c32_27 = arith.constant 32 : index
    %132 = vector.load %arg10[%c4, %c32_27] : memref<8x64xf32, #tpu.memory_space<vmem>>, vector<1x32xf32>
    tpu.vector_store %arg10[%c4, %c32_27], %131 {strides = array<i32>} : memref<8x64xf32, #tpu.memory_space<vmem>>, vector<1x32xf32>,
    %133 = vector.extract_strided_slice %30 {offsets = [3, 0], sizes = [1, 256], strides = [1, 1]} : vector<8x256xf32> to vector<1x256xf32>
    %134 = vector.extract_strided_slice %30 {offsets = [4, 0], sizes = [1, 256], strides = [1, 1]} : vector<8x256xf32> to vector<1x256xf32>
    %135 = arith.select %18, %133, %134 : vector<1x256xi1>, vector<1x256xf32>
    %cst_28 = arith.constant dense<0.000000e+00> : vector<1x256xf32>
    %136 = tpu.matmul %128, %26, %cst_28 {dimension_numbers = #tpu.dot_dimension_numbers<[1], [0], [0], [1], [0, 0, 1, 1], [], []>} : vector<1x64xf32>, vector<64x256xf32>, vector<1x256xf32> -> vector<1x256xf32>
    %137 = arith.addf %135, %136 : vector<1x256xf32>
    %138 = arith.negf %137 : vector<1x256xf32>
    %139 = math.exp %138 : vector<1x256xf32>
    %cst_29 = arith.constant 1.000000e+00 : f32
    %140 = vector.broadcast %cst_29 : f32 to vector<1x256xf32>
    %141 = arith.addf %140, %139 : vector<1x256xf32>
    %142 = arith.divf %140, %141 : vector<1x256xf32>
    %143 = math.tanh %137 : vector<1x256xf32>
    %144 = arith.select %23, %143, %142 : vector<1x256xi1>, vector<1x256xf32>
    %145 = vector.extract_strided_slice %144 {offsets = [0, 0], sizes = [1, 64], strides = [1, 1]} : vector<1x256xf32> to vector<1x64xf32>
    %146 = vector.extract_strided_slice %144 {offsets = [0, 64], sizes = [1, 64], strides = [1, 1]} : vector<1x256xf32> to vector<1x64xf32>
    %147 = vector.extract_strided_slice %144 {offsets = [0, 128], sizes = [1, 64], strides = [1, 1]} : vector<1x256xf32> to vector<1x64xf32>
    %148 = vector.extract_strided_slice %144 {offsets = [0, 192], sizes = [1, 64], strides = [1, 1]} : vector<1x256xf32> to vector<1x64xf32>
    %149 = arith.mulf %146, %126 : vector<1x64xf32>
    %150 = arith.mulf %145, %147 : vector<1x64xf32>
    %151 = arith.addf %149, %150 : vector<1x64xf32>
    %152 = math.tanh %151 : vector<1x64xf32>
    %153 = arith.mulf %148, %152 : vector<1x64xf32>
    %154 = vector.extract_strided_slice %153 {offsets = [0, 0], sizes = [1, 32], strides = [1, 1]} : vector<1x64xf32> to vector<1x32xf32>
    %c4_30 = arith.constant 4 : index
    %c0_31 = arith.constant 0 : index
    %155 = vector.load %arg10[%c4_30, %c0_31] : memref<8x64xf32, #tpu.memory_space<vmem>>, vector<1x32xf32>
    tpu.vector_store %arg10[%c4_30, %c0_31], %154 {strides = array<i32>} : memref<8x64xf32, #tpu.memory_space<vmem>>, vector<1x32xf32>,
    %156 = vector.extract_strided_slice %153 {offsets = [0, 32], sizes = [1, 32], strides = [1, 1]} : vector<1x64xf32> to vector<1x32xf32>
    %c3_32 = arith.constant 3 : index
    %c32_33 = arith.constant 32 : index
    %157 = vector.load %arg10[%c3_32, %c32_33] : memref<8x64xf32, #tpu.memory_space<vmem>>, vector<1x32xf32>
    tpu.vector_store %arg10[%c3_32, %c32_33], %156 {strides = array<i32>} : memref<8x64xf32, #tpu.memory_space<vmem>>, vector<1x32xf32>,
    %158 = vector.extract_strided_slice %30 {offsets = [2, 0], sizes = [1, 256], strides = [1, 1]} : vector<8x256xf32> to vector<1x256xf32>
    %159 = vector.extract_strided_slice %30 {offsets = [5, 0], sizes = [1, 256], strides = [1, 1]} : vector<8x256xf32> to vector<1x256xf32>
    %160 = arith.select %18, %158, %159 : vector<1x256xi1>, vector<1x256xf32>
    %cst_34 = arith.constant dense<0.000000e+00> : vector<1x256xf32>
    %161 = tpu.matmul %153, %26, %cst_34 {dimension_numbers = #tpu.dot_dimension_numbers<[1], [0], [0], [1], [0, 0, 1, 1], [], []>} : vector<1x64xf32>, vector<64x256xf32>, vector<1x256xf32> -> vector<1x256xf32>
    %162 = arith.addf %160, %161 : vector<1x256xf32>
    %163 = arith.negf %162 : vector<1x256xf32>
    %164 = math.exp %163 : vector<1x256xf32>
    %cst_35 = arith.constant 1.000000e+00 : f32
    %165 = vector.broadcast %cst_35 : f32 to vector<1x256xf32>
    %166 = arith.addf %165, %164 : vector<1x256xf32>
    %167 = arith.divf %165, %166 : vector<1x256xf32>
    %168 = math.tanh %162 : vector<1x256xf32>
    %169 = arith.select %23, %168, %167 : vector<1x256xi1>, vector<1x256xf32>
    %170 = vector.extract_strided_slice %169 {offsets = [0, 0], sizes = [1, 64], strides = [1, 1]} : vector<1x256xf32> to vector<1x64xf32>
    %171 = vector.extract_strided_slice %169 {offsets = [0, 64], sizes = [1, 64], strides = [1, 1]} : vector<1x256xf32> to vector<1x64xf32>
    %172 = vector.extract_strided_slice %169 {offsets = [0, 128], sizes = [1, 64], strides = [1, 1]} : vector<1x256xf32> to vector<1x64xf32>
    %173 = vector.extract_strided_slice %169 {offsets = [0, 192], sizes = [1, 64], strides = [1, 1]} : vector<1x256xf32> to vector<1x64xf32>
    %174 = arith.mulf %171, %151 : vector<1x64xf32>
    %175 = arith.mulf %170, %172 : vector<1x64xf32>
    %176 = arith.addf %174, %175 : vector<1x64xf32>
    %177 = math.tanh %176 : vector<1x64xf32>
    %178 = arith.mulf %173, %177 : vector<1x64xf32>
    %179 = vector.extract_strided_slice %178 {offsets = [0, 0], sizes = [1, 32], strides = [1, 1]} : vector<1x64xf32> to vector<1x32xf32>
    %c5_36 = arith.constant 5 : index
    %c0_37 = arith.constant 0 : index
    %180 = vector.load %arg10[%c5_36, %c0_37] : memref<8x64xf32, #tpu.memory_space<vmem>>, vector<1x32xf32>
    tpu.vector_store %arg10[%c5_36, %c0_37], %179 {strides = array<i32>} : memref<8x64xf32, #tpu.memory_space<vmem>>, vector<1x32xf32>,
    %181 = vector.extract_strided_slice %178 {offsets = [0, 32], sizes = [1, 32], strides = [1, 1]} : vector<1x64xf32> to vector<1x32xf32>
    %c2_38 = arith.constant 2 : index
    %c32_39 = arith.constant 32 : index
    %182 = vector.load %arg10[%c2_38, %c32_39] : memref<8x64xf32, #tpu.memory_space<vmem>>, vector<1x32xf32>
    tpu.vector_store %arg10[%c2_38, %c32_39], %181 {strides = array<i32>} : memref<8x64xf32, #tpu.memory_space<vmem>>, vector<1x32xf32>,
    %183 = vector.extract_strided_slice %30 {offsets = [1, 0], sizes = [1, 256], strides = [1, 1]} : vector<8x256xf32> to vector<1x256xf32>
    %184 = vector.extract_strided_slice %30 {offsets = [6, 0], sizes = [1, 256], strides = [1, 1]} : vector<8x256xf32> to vector<1x256xf32>
    %185 = arith.select %18, %183, %184 : vector<1x256xi1>, vector<1x256xf32>
    %cst_40 = arith.constant dense<0.000000e+00> : vector<1x256xf32>
    %186 = tpu.matmul %178, %26, %cst_40 {dimension_numbers = #tpu.dot_dimension_numbers<[1], [0], [0], [1], [0, 0, 1, 1], [], []>} : vector<1x64xf32>, vector<64x256xf32>, vector<1x256xf32> -> vector<1x256xf32>
    %187 = arith.addf %185, %186 : vector<1x256xf32>
    %188 = arith.negf %187 : vector<1x256xf32>
    %189 = math.exp %188 : vector<1x256xf32>
    %cst_41 = arith.constant 1.000000e+00 : f32
    %190 = vector.broadcast %cst_41 : f32 to vector<1x256xf32>
    %191 = arith.addf %190, %189 : vector<1x256xf32>
    %192 = arith.divf %190, %191 : vector<1x256xf32>
    %193 = math.tanh %187 : vector<1x256xf32>
    %194 = arith.select %23, %193, %192 : vector<1x256xi1>, vector<1x256xf32>
    %195 = vector.extract_strided_slice %194 {offsets = [0, 0], sizes = [1, 64], strides = [1, 1]} : vector<1x256xf32> to vector<1x64xf32>
    %196 = vector.extract_strided_slice %194 {offsets = [0, 64], sizes = [1, 64], strides = [1, 1]} : vector<1x256xf32> to vector<1x64xf32>
    %197 = vector.extract_strided_slice %194 {offsets = [0, 128], sizes = [1, 64], strides = [1, 1]} : vector<1x256xf32> to vector<1x64xf32>
    %198 = vector.extract_strided_slice %194 {offsets = [0, 192], sizes = [1, 64], strides = [1, 1]} : vector<1x256xf32> to vector<1x64xf32>
    %199 = arith.mulf %196, %176 : vector<1x64xf32>
    %200 = arith.mulf %195, %197 : vector<1x64xf32>
    %201 = arith.addf %199, %200 : vector<1x64xf32>
    %202 = math.tanh %201 : vector<1x64xf32>
    %203 = arith.mulf %198, %202 : vector<1x64xf32>
    %204 = vector.extract_strided_slice %203 {offsets = [0, 0], sizes = [1, 32], strides = [1, 1]} : vector<1x64xf32> to vector<1x32xf32>
    %c6_42 = arith.constant 6 : index
    %c0_43 = arith.constant 0 : index
    %205 = vector.load %arg10[%c6_42, %c0_43] : memref<8x64xf32, #tpu.memory_space<vmem>>, vector<1x32xf32>
    tpu.vector_store %arg10[%c6_42, %c0_43], %204 {strides = array<i32>} : memref<8x64xf32, #tpu.memory_space<vmem>>, vector<1x32xf32>,
    %206 = vector.extract_strided_slice %203 {offsets = [0, 32], sizes = [1, 32], strides = [1, 1]} : vector<1x64xf32> to vector<1x32xf32>
    %c1_44 = arith.constant 1 : index
    %c32_45 = arith.constant 32 : index
    %207 = vector.load %arg10[%c1_44, %c32_45] : memref<8x64xf32, #tpu.memory_space<vmem>>, vector<1x32xf32>
    tpu.vector_store %arg10[%c1_44, %c32_45], %206 {strides = array<i32>} : memref<8x64xf32, #tpu.memory_space<vmem>>, vector<1x32xf32>,
    %208 = vector.extract_strided_slice %30 {offsets = [0, 0], sizes = [1, 256], strides = [1, 1]} : vector<8x256xf32> to vector<1x256xf32>
    %209 = vector.extract_strided_slice %30 {offsets = [7, 0], sizes = [1, 256], strides = [1, 1]} : vector<8x256xf32> to vector<1x256xf32>
    %210 = arith.select %18, %208, %209 : vector<1x256xi1>, vector<1x256xf32>
    %cst_46 = arith.constant dense<0.000000e+00> : vector<1x256xf32>
    %211 = tpu.matmul %203, %26, %cst_46 {dimension_numbers = #tpu.dot_dimension_numbers<[1], [0], [0], [1], [0, 0, 1, 1], [], []>} : vector<1x64xf32>, vector<64x256xf32>, vector<1x256xf32> -> vector<1x256xf32>
    %212 = arith.addf %210, %211 : vector<1x256xf32>
    %213 = arith.negf %212 : vector<1x256xf32>
    %214 = math.exp %213 : vector<1x256xf32>
    %cst_47 = arith.constant 1.000000e+00 : f32
    %215 = vector.broadcast %cst_47 : f32 to vector<1x256xf32>
    %216 = arith.addf %215, %214 : vector<1x256xf32>
    %217 = arith.divf %215, %216 : vector<1x256xf32>
    %218 = math.tanh %212 : vector<1x256xf32>
    %219 = arith.select %23, %218, %217 : vector<1x256xi1>, vector<1x256xf32>
    %220 = vector.extract_strided_slice %219 {offsets = [0, 0], sizes = [1, 64], strides = [1, 1]} : vector<1x256xf32> to vector<1x64xf32>
    %221 = vector.extract_strided_slice %219 {offsets = [0, 64], sizes = [1, 64], strides = [1, 1]} : vector<1x256xf32> to vector<1x64xf32>
    %222 = vector.extract_strided_slice %219 {offsets = [0, 128], sizes = [1, 64], strides = [1, 1]} : vector<1x256xf32> to vector<1x64xf32>
    %223 = vector.extract_strided_slice %219 {offsets = [0, 192], sizes = [1, 64], strides = [1, 1]} : vector<1x256xf32> to vector<1x64xf32>
    %224 = arith.mulf %221, %201 : vector<1x64xf32>
    %225 = arith.mulf %220, %222 : vector<1x64xf32>
    %226 = arith.addf %224, %225 : vector<1x64xf32>
    %227 = math.tanh %226 : vector<1x64xf32>
    %228 = arith.mulf %223, %227 : vector<1x64xf32>
    %229 = vector.extract_strided_slice %228 {offsets = [0, 0], sizes = [1, 32], strides = [1, 1]} : vector<1x64xf32> to vector<1x32xf32>
    %c7_48 = arith.constant 7 : index
    %c0_49 = arith.constant 0 : index
    %230 = vector.load %arg10[%c7_48, %c0_49] : memref<8x64xf32, #tpu.memory_space<vmem>>, vector<1x32xf32>
    tpu.vector_store %arg10[%c7_48, %c0_49], %229 {strides = array<i32>} : memref<8x64xf32, #tpu.memory_space<vmem>>, vector<1x32xf32>,
    %231 = vector.extract_strided_slice %228 {offsets = [0, 32], sizes = [1, 32], strides = [1, 1]} : vector<1x64xf32> to vector<1x32xf32>
    %c0_50 = arith.constant 0 : index
    %c32_51 = arith.constant 32 : index
    %232 = vector.load %arg10[%c0_50, %c32_51] : memref<8x64xf32, #tpu.memory_space<vmem>>, vector<1x32xf32>
    tpu.vector_store %arg10[%c0_50, %c32_51], %231 {strides = array<i32>} : memref<8x64xf32, #tpu.memory_space<vmem>>, vector<1x32xf32>,
    %233 = vector.extract_strided_slice %228 {offsets = [0, 0], sizes = [1, 32], strides = [1, 1]} : vector<1x64xf32> to vector<1x32xf32>
    %c0_52 = arith.constant 0 : index
    %c0_53 = arith.constant 0 : index
    %234 = vector.load %arg8[%c0_52, %c0_53] : memref<4x32xf32, #tpu.memory_space<vmem>>, vector<1x32xf32>
    tpu.vector_store %arg8[%c0_52, %c0_53], %233 {strides = array<i32>} : memref<4x32xf32, #tpu.memory_space<vmem>>, vector<1x32xf32>,
    %235 = vector.extract_strided_slice %228 {offsets = [0, 32], sizes = [1, 32], strides = [1, 1]} : vector<1x64xf32> to vector<1x32xf32>
    %c1_54 = arith.constant 1 : index
    %c0_55 = arith.constant 0 : index
    %236 = vector.load %arg8[%c1_54, %c0_55] : memref<4x32xf32, #tpu.memory_space<vmem>>, vector<1x32xf32>
    tpu.vector_store %arg8[%c1_54, %c0_55], %235 {strides = array<i32>} : memref<4x32xf32, #tpu.memory_space<vmem>>, vector<1x32xf32>,
    %237 = vector.extract_strided_slice %226 {offsets = [0, 0], sizes = [1, 32], strides = [1, 1]} : vector<1x64xf32> to vector<1x32xf32>
    %c0_56 = arith.constant 0 : index
    %c0_57 = arith.constant 0 : index
    %238 = vector.load %arg9[%c0_56, %c0_57] : memref<4x32xf32, #tpu.memory_space<vmem>>, vector<1x32xf32>
    tpu.vector_store %arg9[%c0_56, %c0_57], %237 {strides = array<i32>} : memref<4x32xf32, #tpu.memory_space<vmem>>, vector<1x32xf32>,
    %239 = vector.extract_strided_slice %226 {offsets = [0, 32], sizes = [1, 32], strides = [1, 1]} : vector<1x64xf32> to vector<1x32xf32>
    %c1_58 = arith.constant 1 : index
    %c0_59 = arith.constant 0 : index
    %240 = vector.load %arg9[%c1_58, %c0_59] : memref<4x32xf32, #tpu.memory_space<vmem>>, vector<1x32xf32>
    tpu.vector_store %arg9[%c1_58, %c0_59], %239 {strides = array<i32>} : memref<4x32xf32, #tpu.memory_space<vmem>>, vector<1x32xf32>,
    %c0_60 = arith.constant 0 : index
    %c0_61 = arith.constant 0 : index
    %241 = vector.load %arg10[%c0_60, %c0_61] : memref<8x64xf32, #tpu.memory_space<vmem>>, vector<8x64xf32>
    %c0_62 = arith.constant 0 : index
    %c0_63 = arith.constant 0 : index
    %242 = vector.load %arg4[%c0_62, %c0_63] : memref<64x256xf32, #tpu.memory_space<vmem>>, vector<64x256xf32>
    %c0_64 = arith.constant 0 : index
    %c0_65 = arith.constant 0 : index
    %243 = vector.load %arg5[%c0_64, %c0_65] : memref<64x256xf32, #tpu.memory_space<vmem>>, vector<64x256xf32>
    %c0_66 = arith.constant 0 : index
    %c0_67 = arith.constant 0 : index
    %244 = vector.load %arg6[%c0_66, %c0_67] : memref<1x256xf32, #tpu.memory_space<vmem>>, vector<1x256xf32>
    %cst_68 = arith.constant dense<0.000000e+00> : vector<8x256xf32>
    %245 = tpu.matmul %241, %242, %cst_68 {dimension_numbers = #tpu.dot_dimension_numbers<[1], [0], [0], [1], [0, 0, 1, 1], [], []>} : vector<8x64xf32>, vector<64x256xf32>, vector<8x256xf32> -> vector<8x256xf32>
    %246 = vector.broadcast %244 : vector<1x256xf32> to vector<8x256xf32>
    %247 = arith.addf %245, %246 : vector<8x256xf32>
    %cst_69 = arith.constant 0.000000e+00 : f32
    %248 = vector.broadcast %cst_69 : f32 to vector<1x64xf32>
    %cst_70 = arith.constant 0.000000e+00 : f32
    %249 = vector.broadcast %cst_70 : f32 to vector<1x64xf32>
    %250 = vector.extract_strided_slice %247 {offsets = [7, 0], sizes = [1, 256], strides = [1, 1]} : vector<8x256xf32> to vector<1x256xf32>
    %251 = vector.extract_strided_slice %247 {offsets = [0, 0], sizes = [1, 256], strides = [1, 1]} : vector<8x256xf32> to vector<1x256xf32>
    %252 = arith.select %18, %250, %251 : vector<1x256xi1>, vector<1x256xf32>
    %cst_71 = arith.constant dense<0.000000e+00> : vector<1x256xf32>
    %253 = tpu.matmul %248, %243, %cst_71 {dimension_numbers = #tpu.dot_dimension_numbers<[1], [0], [0], [1], [0, 0, 1, 1], [], []>} : vector<1x64xf32>, vector<64x256xf32>, vector<1x256xf32> -> vector<1x256xf32>
    %254 = arith.addf %252, %253 : vector<1x256xf32>
    %255 = arith.negf %254 : vector<1x256xf32>
    %256 = math.exp %255 : vector<1x256xf32>
    %cst_72 = arith.constant 1.000000e+00 : f32
    %257 = vector.broadcast %cst_72 : f32 to vector<1x256xf32>
    %258 = arith.addf %257, %256 : vector<1x256xf32>
    %259 = arith.divf %257, %258 : vector<1x256xf32>
    %260 = math.tanh %254 : vector<1x256xf32>
    %261 = arith.select %23, %260, %259 : vector<1x256xi1>, vector<1x256xf32>
    %262 = vector.extract_strided_slice %261 {offsets = [0, 0], sizes = [1, 64], strides = [1, 1]} : vector<1x256xf32> to vector<1x64xf32>
    %263 = vector.extract_strided_slice %261 {offsets = [0, 64], sizes = [1, 64], strides = [1, 1]} : vector<1x256xf32> to vector<1x64xf32>
    %264 = vector.extract_strided_slice %261 {offsets = [0, 128], sizes = [1, 64], strides = [1, 1]} : vector<1x256xf32> to vector<1x64xf32>
    %265 = vector.extract_strided_slice %261 {offsets = [0, 192], sizes = [1, 64], strides = [1, 1]} : vector<1x256xf32> to vector<1x64xf32>
    %266 = arith.mulf %263, %249 : vector<1x64xf32>
    %267 = arith.mulf %262, %264 : vector<1x64xf32>
    %268 = arith.addf %266, %267 : vector<1x64xf32>
    %269 = math.tanh %268 : vector<1x64xf32>
    %270 = arith.mulf %265, %269 : vector<1x64xf32>
    %271 = vector.extract_strided_slice %270 {offsets = [0, 0], sizes = [1, 32], strides = [1, 1]} : vector<1x64xf32> to vector<1x32xf32>
    %c0_73 = arith.constant 0 : index
    %c0_74 = arith.constant 0 : index
    %272 = vector.load %arg10[%c0_73, %c0_74] : memref<8x64xf32, #tpu.memory_space<vmem>>, vector<1x32xf32>
    tpu.vector_store %arg10[%c0_73, %c0_74], %271 {strides = array<i32>} : memref<8x64xf32, #tpu.memory_space<vmem>>, vector<1x32xf32>,
    %273 = vector.extract_strided_slice %270 {offsets = [0, 32], sizes = [1, 32], strides = [1, 1]} : vector<1x64xf32> to vector<1x32xf32>
    %c7_75 = arith.constant 7 : index
    %c32_76 = arith.constant 32 : index
    %274 = vector.load %arg10[%c7_75, %c32_76] : memref<8x64xf32, #tpu.memory_space<vmem>>, vector<1x32xf32>
    tpu.vector_store %arg10[%c7_75, %c32_76], %273 {strides = array<i32>} : memref<8x64xf32, #tpu.memory_space<vmem>>, vector<1x32xf32>,
    %275 = vector.extract_strided_slice %247 {offsets = [6, 0], sizes = [1, 256], strides = [1, 1]} : vector<8x256xf32> to vector<1x256xf32>
    %276 = vector.extract_strided_slice %247 {offsets = [1, 0], sizes = [1, 256], strides = [1, 1]} : vector<8x256xf32> to vector<1x256xf32>
    %277 = arith.select %18, %275, %276 : vector<1x256xi1>, vector<1x256xf32>
    %cst_77 = arith.constant dense<0.000000e+00> : vector<1x256xf32>
    %278 = tpu.matmul %270, %243, %cst_77 {dimension_numbers = #tpu.dot_dimension_numbers<[1], [0], [0], [1], [0, 0, 1, 1], [], []>} : vector<1x64xf32>, vector<64x256xf32>, vector<1x256xf32> -> vector<1x256xf32>
    %279 = arith.addf %277, %278 : vector<1x256xf32>
    %280 = arith.negf %279 : vector<1x256xf32>
    %281 = math.exp %280 : vector<1x256xf32>
    %cst_78 = arith.constant 1.000000e+00 : f32
    %282 = vector.broadcast %cst_78 : f32 to vector<1x256xf32>
    %283 = arith.addf %282, %281 : vector<1x256xf32>
    %284 = arith.divf %282, %283 : vector<1x256xf32>
    %285 = math.tanh %279 : vector<1x256xf32>
    %286 = arith.select %23, %285, %284 : vector<1x256xi1>, vector<1x256xf32>
    %287 = vector.extract_strided_slice %286 {offsets = [0, 0], sizes = [1, 64], strides = [1, 1]} : vector<1x256xf32> to vector<1x64xf32>
    %288 = vector.extract_strided_slice %286 {offsets = [0, 64], sizes = [1, 64], strides = [1, 1]} : vector<1x256xf32> to vector<1x64xf32>
    %289 = vector.extract_strided_slice %286 {offsets = [0, 128], sizes = [1, 64], strides = [1, 1]} : vector<1x256xf32> to vector<1x64xf32>
    %290 = vector.extract_strided_slice %286 {offsets = [0, 192], sizes = [1, 64], strides = [1, 1]} : vector<1x256xf32> to vector<1x64xf32>
    %291 = arith.mulf %288, %268 : vector<1x64xf32>
    %292 = arith.mulf %287, %289 : vector<1x64xf32>
    %293 = arith.addf %291, %292 : vector<1x64xf32>
    %294 = math.tanh %293 : vector<1x64xf32>
    %295 = arith.mulf %290, %294 : vector<1x64xf32>
    %296 = vector.extract_strided_slice %295 {offsets = [0, 0], sizes = [1, 32], strides = [1, 1]} : vector<1x64xf32> to vector<1x32xf32>
    %c1_79 = arith.constant 1 : index
    %c0_80 = arith.constant 0 : index
    %297 = vector.load %arg10[%c1_79, %c0_80] : memref<8x64xf32, #tpu.memory_space<vmem>>, vector<1x32xf32>
    tpu.vector_store %arg10[%c1_79, %c0_80], %296 {strides = array<i32>} : memref<8x64xf32, #tpu.memory_space<vmem>>, vector<1x32xf32>,
    %298 = vector.extract_strided_slice %295 {offsets = [0, 32], sizes = [1, 32], strides = [1, 1]} : vector<1x64xf32> to vector<1x32xf32>
    %c6_81 = arith.constant 6 : index
    %c32_82 = arith.constant 32 : index
    %299 = vector.load %arg10[%c6_81, %c32_82] : memref<8x64xf32, #tpu.memory_space<vmem>>, vector<1x32xf32>
    tpu.vector_store %arg10[%c6_81, %c32_82], %298 {strides = array<i32>} : memref<8x64xf32, #tpu.memory_space<vmem>>, vector<1x32xf32>,
    %300 = vector.extract_strided_slice %247 {offsets = [5, 0], sizes = [1, 256], strides = [1, 1]} : vector<8x256xf32> to vector<1x256xf32>
    %301 = vector.extract_strided_slice %247 {offsets = [2, 0], sizes = [1, 256], strides = [1, 1]} : vector<8x256xf32> to vector<1x256xf32>
    %302 = arith.select %18, %300, %301 : vector<1x256xi1>, vector<1x256xf32>
    %cst_83 = arith.constant dense<0.000000e+00> : vector<1x256xf32>
    %303 = tpu.matmul %295, %243, %cst_83 {dimension_numbers = #tpu.dot_dimension_numbers<[1], [0], [0], [1], [0, 0, 1, 1], [], []>} : vector<1x64xf32>, vector<64x256xf32>, vector<1x256xf32> -> vector<1x256xf32>
    %304 = arith.addf %302, %303 : vector<1x256xf32>
    %305 = arith.negf %304 : vector<1x256xf32>
    %306 = math.exp %305 : vector<1x256xf32>
    %cst_84 = arith.constant 1.000000e+00 : f32
    %307 = vector.broadcast %cst_84 : f32 to vector<1x256xf32>
    %308 = arith.addf %307, %306 : vector<1x256xf32>
    %309 = arith.divf %307, %308 : vector<1x256xf32>
    %310 = math.tanh %304 : vector<1x256xf32>
    %311 = arith.select %23, %310, %309 : vector<1x256xi1>, vector<1x256xf32>
    %312 = vector.extract_strided_slice %311 {offsets = [0, 0], sizes = [1, 64], strides = [1, 1]} : vector<1x256xf32> to vector<1x64xf32>
    %313 = vector.extract_strided_slice %311 {offsets = [0, 64], sizes = [1, 64], strides = [1, 1]} : vector<1x256xf32> to vector<1x64xf32>
    %314 = vector.extract_strided_slice %311 {offsets = [0, 128], sizes = [1, 64], strides = [1, 1]} : vector<1x256xf32> to vector<1x64xf32>
    %315 = vector.extract_strided_slice %311 {offsets = [0, 192], sizes = [1, 64], strides = [1, 1]} : vector<1x256xf32> to vector<1x64xf32>
    %316 = arith.mulf %313, %293 : vector<1x64xf32>
    %317 = arith.mulf %312, %314 : vector<1x64xf32>
    %318 = arith.addf %316, %317 : vector<1x64xf32>
    %319 = math.tanh %318 : vector<1x64xf32>
    %320 = arith.mulf %315, %319 : vector<1x64xf32>
    %321 = vector.extract_strided_slice %320 {offsets = [0, 0], sizes = [1, 32], strides = [1, 1]} : vector<1x64xf32> to vector<1x32xf32>
    %c2_85 = arith.constant 2 : index
    %c0_86 = arith.constant 0 : index
    %322 = vector.load %arg10[%c2_85, %c0_86] : memref<8x64xf32, #tpu.memory_space<vmem>>, vector<1x32xf32>
    tpu.vector_store %arg10[%c2_85, %c0_86], %321 {strides = array<i32>} : memref<8x64xf32, #tpu.memory_space<vmem>>, vector<1x32xf32>,
    %323 = vector.extract_strided_slice %320 {offsets = [0, 32], sizes = [1, 32], strides = [1, 1]} : vector<1x64xf32> to vector<1x32xf32>
    %c5_87 = arith.constant 5 : index
    %c32_88 = arith.constant 32 : index
    %324 = vector.load %arg10[%c5_87, %c32_88] : memref<8x64xf32, #tpu.memory_space<vmem>>, vector<1x32xf32>
    tpu.vector_store %arg10[%c5_87, %c32_88], %323 {strides = array<i32>} : memref<8x64xf32, #tpu.memory_space<vmem>>, vector<1x32xf32>,
    %325 = vector.extract_strided_slice %247 {offsets = [4, 0], sizes = [1, 256], strides = [1, 1]} : vector<8x256xf32> to vector<1x256xf32>
    %326 = vector.extract_strided_slice %247 {offsets = [3, 0], sizes = [1, 256], strides = [1, 1]} : vector<8x256xf32> to vector<1x256xf32>
    %327 = arith.select %18, %325, %326 : vector<1x256xi1>, vector<1x256xf32>
    %cst_89 = arith.constant dense<0.000000e+00> : vector<1x256xf32>
    %328 = tpu.matmul %320, %243, %cst_89 {dimension_numbers = #tpu.dot_dimension_numbers<[1], [0], [0], [1], [0, 0, 1, 1], [], []>} : vector<1x64xf32>, vector<64x256xf32>, vector<1x256xf32> -> vector<1x256xf32>
    %329 = arith.addf %327, %328 : vector<1x256xf32>
    %330 = arith.negf %329 : vector<1x256xf32>
    %331 = math.exp %330 : vector<1x256xf32>
    %cst_90 = arith.constant 1.000000e+00 : f32
    %332 = vector.broadcast %cst_90 : f32 to vector<1x256xf32>
    %333 = arith.addf %332, %331 : vector<1x256xf32>
    %334 = arith.divf %332, %333 : vector<1x256xf32>
    %335 = math.tanh %329 : vector<1x256xf32>
    %336 = arith.select %23, %335, %334 : vector<1x256xi1>, vector<1x256xf32>
    %337 = vector.extract_strided_slice %336 {offsets = [0, 0], sizes = [1, 64], strides = [1, 1]} : vector<1x256xf32> to vector<1x64xf32>
    %338 = vector.extract_strided_slice %336 {offsets = [0, 64], sizes = [1, 64], strides = [1, 1]} : vector<1x256xf32> to vector<1x64xf32>
    %339 = vector.extract_strided_slice %336 {offsets = [0, 128], sizes = [1, 64], strides = [1, 1]} : vector<1x256xf32> to vector<1x64xf32>
    %340 = vector.extract_strided_slice %336 {offsets = [0, 192], sizes = [1, 64], strides = [1, 1]} : vector<1x256xf32> to vector<1x64xf32>
    %341 = arith.mulf %338, %318 : vector<1x64xf32>
    %342 = arith.mulf %337, %339 : vector<1x64xf32>
    %343 = arith.addf %341, %342 : vector<1x64xf32>
    %344 = math.tanh %343 : vector<1x64xf32>
    %345 = arith.mulf %340, %344 : vector<1x64xf32>
    %346 = vector.extract_strided_slice %345 {offsets = [0, 0], sizes = [1, 32], strides = [1, 1]} : vector<1x64xf32> to vector<1x32xf32>
    %c3_91 = arith.constant 3 : index
    %c0_92 = arith.constant 0 : index
    %347 = vector.load %arg10[%c3_91, %c0_92] : memref<8x64xf32, #tpu.memory_space<vmem>>, vector<1x32xf32>
    tpu.vector_store %arg10[%c3_91, %c0_92], %346 {strides = array<i32>} : memref<8x64xf32, #tpu.memory_space<vmem>>, vector<1x32xf32>,
    %348 = vector.extract_strided_slice %345 {offsets = [0, 32], sizes = [1, 32], strides = [1, 1]} : vector<1x64xf32> to vector<1x32xf32>
    %c4_93 = arith.constant 4 : index
    %c32_94 = arith.constant 32 : index
    %349 = vector.load %arg10[%c4_93, %c32_94] : memref<8x64xf32, #tpu.memory_space<vmem>>, vector<1x32xf32>
    tpu.vector_store %arg10[%c4_93, %c32_94], %348 {strides = array<i32>} : memref<8x64xf32, #tpu.memory_space<vmem>>, vector<1x32xf32>,
    %350 = vector.extract_strided_slice %247 {offsets = [3, 0], sizes = [1, 256], strides = [1, 1]} : vector<8x256xf32> to vector<1x256xf32>
    %351 = vector.extract_strided_slice %247 {offsets = [4, 0], sizes = [1, 256], strides = [1, 1]} : vector<8x256xf32> to vector<1x256xf32>
    %352 = arith.select %18, %350, %351 : vector<1x256xi1>, vector<1x256xf32>
    %cst_95 = arith.constant dense<0.000000e+00> : vector<1x256xf32>
    %353 = tpu.matmul %345, %243, %cst_95 {dimension_numbers = #tpu.dot_dimension_numbers<[1], [0], [0], [1], [0, 0, 1, 1], [], []>} : vector<1x64xf32>, vector<64x256xf32>, vector<1x256xf32> -> vector<1x256xf32>
    %354 = arith.addf %352, %353 : vector<1x256xf32>
    %355 = arith.negf %354 : vector<1x256xf32>
    %356 = math.exp %355 : vector<1x256xf32>
    %cst_96 = arith.constant 1.000000e+00 : f32
    %357 = vector.broadcast %cst_96 : f32 to vector<1x256xf32>
    %358 = arith.addf %357, %356 : vector<1x256xf32>
    %359 = arith.divf %357, %358 : vector<1x256xf32>
    %360 = math.tanh %354 : vector<1x256xf32>
    %361 = arith.select %23, %360, %359 : vector<1x256xi1>, vector<1x256xf32>
    %362 = vector.extract_strided_slice %361 {offsets = [0, 0], sizes = [1, 64], strides = [1, 1]} : vector<1x256xf32> to vector<1x64xf32>
    %363 = vector.extract_strided_slice %361 {offsets = [0, 64], sizes = [1, 64], strides = [1, 1]} : vector<1x256xf32> to vector<1x64xf32>
    %364 = vector.extract_strided_slice %361 {offsets = [0, 128], sizes = [1, 64], strides = [1, 1]} : vector<1x256xf32> to vector<1x64xf32>
    %365 = vector.extract_strided_slice %361 {offsets = [0, 192], sizes = [1, 64], strides = [1, 1]} : vector<1x256xf32> to vector<1x64xf32>
    %366 = arith.mulf %363, %343 : vector<1x64xf32>
    %367 = arith.mulf %362, %364 : vector<1x64xf32>
    %368 = arith.addf %366, %367 : vector<1x64xf32>
    %369 = math.tanh %368 : vector<1x64xf32>
    %370 = arith.mulf %365, %369 : vector<1x64xf32>
    %371 = vector.extract_strided_slice %370 {offsets = [0, 0], sizes = [1, 32], strides = [1, 1]} : vector<1x64xf32> to vector<1x32xf32>
    %c4_97 = arith.constant 4 : index
    %c0_98 = arith.constant 0 : index
    %372 = vector.load %arg10[%c4_97, %c0_98] : memref<8x64xf32, #tpu.memory_space<vmem>>, vector<1x32xf32>
    tpu.vector_store %arg10[%c4_97, %c0_98], %371 {strides = array<i32>} : memref<8x64xf32, #tpu.memory_space<vmem>>, vector<1x32xf32>,
    %373 = vector.extract_strided_slice %370 {offsets = [0, 32], sizes = [1, 32], strides = [1, 1]} : vector<1x64xf32> to vector<1x32xf32>
    %c3_99 = arith.constant 3 : index
    %c32_100 = arith.constant 32 : index
    %374 = vector.load %arg10[%c3_99, %c32_100] : memref<8x64xf32, #tpu.memory_space<vmem>>, vector<1x32xf32>
    tpu.vector_store %arg10[%c3_99, %c32_100], %373 {strides = array<i32>} : memref<8x64xf32, #tpu.memory_space<vmem>>, vector<1x32xf32>,
    %375 = vector.extract_strided_slice %247 {offsets = [2, 0], sizes = [1, 256], strides = [1, 1]} : vector<8x256xf32> to vector<1x256xf32>
    %376 = vector.extract_strided_slice %247 {offsets = [5, 0], sizes = [1, 256], strides = [1, 1]} : vector<8x256xf32> to vector<1x256xf32>
    %377 = arith.select %18, %375, %376 : vector<1x256xi1>, vector<1x256xf32>
    %cst_101 = arith.constant dense<0.000000e+00> : vector<1x256xf32>
    %378 = tpu.matmul %370, %243, %cst_101 {dimension_numbers = #tpu.dot_dimension_numbers<[1], [0], [0], [1], [0, 0, 1, 1], [], []>} : vector<1x64xf32>, vector<64x256xf32>, vector<1x256xf32> -> vector<1x256xf32>
    %379 = arith.addf %377, %378 : vector<1x256xf32>
    %380 = arith.negf %379 : vector<1x256xf32>
    %381 = math.exp %380 : vector<1x256xf32>
    %cst_102 = arith.constant 1.000000e+00 : f32
    %382 = vector.broadcast %cst_102 : f32 to vector<1x256xf32>
    %383 = arith.addf %382, %381 : vector<1x256xf32>
    %384 = arith.divf %382, %383 : vector<1x256xf32>
    %385 = math.tanh %379 : vector<1x256xf32>
    %386 = arith.select %23, %385, %384 : vector<1x256xi1>, vector<1x256xf32>
    %387 = vector.extract_strided_slice %386 {offsets = [0, 0], sizes = [1, 64], strides = [1, 1]} : vector<1x256xf32> to vector<1x64xf32>
    %388 = vector.extract_strided_slice %386 {offsets = [0, 64], sizes = [1, 64], strides = [1, 1]} : vector<1x256xf32> to vector<1x64xf32>
    %389 = vector.extract_strided_slice %386 {offsets = [0, 128], sizes = [1, 64], strides = [1, 1]} : vector<1x256xf32> to vector<1x64xf32>
    %390 = vector.extract_strided_slice %386 {offsets = [0, 192], sizes = [1, 64], strides = [1, 1]} : vector<1x256xf32> to vector<1x64xf32>
    %391 = arith.mulf %388, %368 : vector<1x64xf32>
    %392 = arith.mulf %387, %389 : vector<1x64xf32>
    %393 = arith.addf %391, %392 : vector<1x64xf32>
    %394 = math.tanh %393 : vector<1x64xf32>
    %395 = arith.mulf %390, %394 : vector<1x64xf32>
    %396 = vector.extract_strided_slice %395 {offsets = [0, 0], sizes = [1, 32], strides = [1, 1]} : vector<1x64xf32> to vector<1x32xf32>
    %c5_103 = arith.constant 5 : index
    %c0_104 = arith.constant 0 : index
    %397 = vector.load %arg10[%c5_103, %c0_104] : memref<8x64xf32, #tpu.memory_space<vmem>>, vector<1x32xf32>
    tpu.vector_store %arg10[%c5_103, %c0_104], %396 {strides = array<i32>} : memref<8x64xf32, #tpu.memory_space<vmem>>, vector<1x32xf32>,
    %398 = vector.extract_strided_slice %395 {offsets = [0, 32], sizes = [1, 32], strides = [1, 1]} : vector<1x64xf32> to vector<1x32xf32>
    %c2_105 = arith.constant 2 : index
    %c32_106 = arith.constant 32 : index
    %399 = vector.load %arg10[%c2_105, %c32_106] : memref<8x64xf32, #tpu.memory_space<vmem>>, vector<1x32xf32>
    tpu.vector_store %arg10[%c2_105, %c32_106], %398 {strides = array<i32>} : memref<8x64xf32, #tpu.memory_space<vmem>>, vector<1x32xf32>,
    %400 = vector.extract_strided_slice %247 {offsets = [1, 0], sizes = [1, 256], strides = [1, 1]} : vector<8x256xf32> to vector<1x256xf32>
    %401 = vector.extract_strided_slice %247 {offsets = [6, 0], sizes = [1, 256], strides = [1, 1]} : vector<8x256xf32> to vector<1x256xf32>
    %402 = arith.select %18, %400, %401 : vector<1x256xi1>, vector<1x256xf32>
    %cst_107 = arith.constant dense<0.000000e+00> : vector<1x256xf32>
    %403 = tpu.matmul %395, %243, %cst_107 {dimension_numbers = #tpu.dot_dimension_numbers<[1], [0], [0], [1], [0, 0, 1, 1], [], []>} : vector<1x64xf32>, vector<64x256xf32>, vector<1x256xf32> -> vector<1x256xf32>
    %404 = arith.addf %402, %403 : vector<1x256xf32>
    %405 = arith.negf %404 : vector<1x256xf32>
    %406 = math.exp %405 : vector<1x256xf32>
    %cst_108 = arith.constant 1.000000e+00 : f32
    %407 = vector.broadcast %cst_108 : f32 to vector<1x256xf32>
    %408 = arith.addf %407, %406 : vector<1x256xf32>
    %409 = arith.divf %407, %408 : vector<1x256xf32>
    %410 = math.tanh %404 : vector<1x256xf32>
    %411 = arith.select %23, %410, %409 : vector<1x256xi1>, vector<1x256xf32>
    %412 = vector.extract_strided_slice %411 {offsets = [0, 0], sizes = [1, 64], strides = [1, 1]} : vector<1x256xf32> to vector<1x64xf32>
    %413 = vector.extract_strided_slice %411 {offsets = [0, 64], sizes = [1, 64], strides = [1, 1]} : vector<1x256xf32> to vector<1x64xf32>
    %414 = vector.extract_strided_slice %411 {offsets = [0, 128], sizes = [1, 64], strides = [1, 1]} : vector<1x256xf32> to vector<1x64xf32>
    %415 = vector.extract_strided_slice %411 {offsets = [0, 192], sizes = [1, 64], strides = [1, 1]} : vector<1x256xf32> to vector<1x64xf32>
    %416 = arith.mulf %413, %393 : vector<1x64xf32>
    %417 = arith.mulf %412, %414 : vector<1x64xf32>
    %418 = arith.addf %416, %417 : vector<1x64xf32>
    %419 = math.tanh %418 : vector<1x64xf32>
    %420 = arith.mulf %415, %419 : vector<1x64xf32>
    %421 = vector.extract_strided_slice %420 {offsets = [0, 0], sizes = [1, 32], strides = [1, 1]} : vector<1x64xf32> to vector<1x32xf32>
    %c6_109 = arith.constant 6 : index
    %c0_110 = arith.constant 0 : index
    %422 = vector.load %arg10[%c6_109, %c0_110] : memref<8x64xf32, #tpu.memory_space<vmem>>, vector<1x32xf32>
    tpu.vector_store %arg10[%c6_109, %c0_110], %421 {strides = array<i32>} : memref<8x64xf32, #tpu.memory_space<vmem>>, vector<1x32xf32>,
    %423 = vector.extract_strided_slice %420 {offsets = [0, 32], sizes = [1, 32], strides = [1, 1]} : vector<1x64xf32> to vector<1x32xf32>
    %c1_111 = arith.constant 1 : index
    %c32_112 = arith.constant 32 : index
    %424 = vector.load %arg10[%c1_111, %c32_112] : memref<8x64xf32, #tpu.memory_space<vmem>>, vector<1x32xf32>
    tpu.vector_store %arg10[%c1_111, %c32_112], %423 {strides = array<i32>} : memref<8x64xf32, #tpu.memory_space<vmem>>, vector<1x32xf32>,
    %425 = vector.extract_strided_slice %247 {offsets = [0, 0], sizes = [1, 256], strides = [1, 1]} : vector<8x256xf32> to vector<1x256xf32>
    %426 = vector.extract_strided_slice %247 {offsets = [7, 0], sizes = [1, 256], strides = [1, 1]} : vector<8x256xf32> to vector<1x256xf32>
    %427 = arith.select %18, %425, %426 : vector<1x256xi1>, vector<1x256xf32>
    %cst_113 = arith.constant dense<0.000000e+00> : vector<1x256xf32>
    %428 = tpu.matmul %420, %243, %cst_113 {dimension_numbers = #tpu.dot_dimension_numbers<[1], [0], [0], [1], [0, 0, 1, 1], [], []>} : vector<1x64xf32>, vector<64x256xf32>, vector<1x256xf32> -> vector<1x256xf32>
    %429 = arith.addf %427, %428 : vector<1x256xf32>
    %430 = arith.negf %429 : vector<1x256xf32>
    %431 = math.exp %430 : vector<1x256xf32>
    %cst_114 = arith.constant 1.000000e+00 : f32
    %432 = vector.broadcast %cst_114 : f32 to vector<1x256xf32>
    %433 = arith.addf %432, %431 : vector<1x256xf32>
    %434 = arith.divf %432, %433 : vector<1x256xf32>
    %435 = math.tanh %429 : vector<1x256xf32>
    %436 = arith.select %23, %435, %434 : vector<1x256xi1>, vector<1x256xf32>
    %437 = vector.extract_strided_slice %436 {offsets = [0, 0], sizes = [1, 64], strides = [1, 1]} : vector<1x256xf32> to vector<1x64xf32>
    %438 = vector.extract_strided_slice %436 {offsets = [0, 64], sizes = [1, 64], strides = [1, 1]} : vector<1x256xf32> to vector<1x64xf32>
    %439 = vector.extract_strided_slice %436 {offsets = [0, 128], sizes = [1, 64], strides = [1, 1]} : vector<1x256xf32> to vector<1x64xf32>
    %440 = vector.extract_strided_slice %436 {offsets = [0, 192], sizes = [1, 64], strides = [1, 1]} : vector<1x256xf32> to vector<1x64xf32>
    %441 = arith.mulf %438, %418 : vector<1x64xf32>
    %442 = arith.mulf %437, %439 : vector<1x64xf32>
    %443 = arith.addf %441, %442 : vector<1x64xf32>
    %444 = math.tanh %443 : vector<1x64xf32>
    %445 = arith.mulf %440, %444 : vector<1x64xf32>
    %446 = vector.extract_strided_slice %445 {offsets = [0, 0], sizes = [1, 32], strides = [1, 1]} : vector<1x64xf32> to vector<1x32xf32>
    %c7_115 = arith.constant 7 : index
    %c0_116 = arith.constant 0 : index
    %447 = vector.load %arg10[%c7_115, %c0_116] : memref<8x64xf32, #tpu.memory_space<vmem>>, vector<1x32xf32>
    tpu.vector_store %arg10[%c7_115, %c0_116], %446 {strides = array<i32>} : memref<8x64xf32, #tpu.memory_space<vmem>>, vector<1x32xf32>,
    %448 = vector.extract_strided_slice %445 {offsets = [0, 32], sizes = [1, 32], strides = [1, 1]} : vector<1x64xf32> to vector<1x32xf32>
    %c0_117 = arith.constant 0 : index
    %c32_118 = arith.constant 32 : index
    %449 = vector.load %arg10[%c0_117, %c32_118] : memref<8x64xf32, #tpu.memory_space<vmem>>, vector<1x32xf32>
    tpu.vector_store %arg10[%c0_117, %c32_118], %448 {strides = array<i32>} : memref<8x64xf32, #tpu.memory_space<vmem>>, vector<1x32xf32>,
    %450 = vector.extract_strided_slice %445 {offsets = [0, 0], sizes = [1, 32], strides = [1, 1]} : vector<1x64xf32> to vector<1x32xf32>
    %c2_119 = arith.constant 2 : index
    %c0_120 = arith.constant 0 : index
    %451 = vector.load %arg8[%c2_119, %c0_120] : memref<4x32xf32, #tpu.memory_space<vmem>>, vector<1x32xf32>
    tpu.vector_store %arg8[%c2_119, %c0_120], %450 {strides = array<i32>} : memref<4x32xf32, #tpu.memory_space<vmem>>, vector<1x32xf32>,
    %452 = vector.extract_strided_slice %445 {offsets = [0, 32], sizes = [1, 32], strides = [1, 1]} : vector<1x64xf32> to vector<1x32xf32>
    %c3_121 = arith.constant 3 : index
    %c0_122 = arith.constant 0 : index
    %453 = vector.load %arg8[%c3_121, %c0_122] : memref<4x32xf32, #tpu.memory_space<vmem>>, vector<1x32xf32>
    tpu.vector_store %arg8[%c3_121, %c0_122], %452 {strides = array<i32>} : memref<4x32xf32, #tpu.memory_space<vmem>>, vector<1x32xf32>,
    %454 = vector.extract_strided_slice %443 {offsets = [0, 0], sizes = [1, 32], strides = [1, 1]} : vector<1x64xf32> to vector<1x32xf32>
    %c2_123 = arith.constant 2 : index
    %c0_124 = arith.constant 0 : index
    %455 = vector.load %arg9[%c2_123, %c0_124] : memref<4x32xf32, #tpu.memory_space<vmem>>, vector<1x32xf32>
    tpu.vector_store %arg9[%c2_123, %c0_124], %454 {strides = array<i32>} : memref<4x32xf32, #tpu.memory_space<vmem>>, vector<1x32xf32>,
    %456 = vector.extract_strided_slice %443 {offsets = [0, 32], sizes = [1, 32], strides = [1, 1]} : vector<1x64xf32> to vector<1x32xf32>
    %c3_125 = arith.constant 3 : index
    %c0_126 = arith.constant 0 : index
    %457 = vector.load %arg9[%c3_125, %c0_126] : memref<4x32xf32, #tpu.memory_space<vmem>>, vector<1x32xf32>
    tpu.vector_store %arg9[%c3_125, %c0_126], %456 {strides = array<i32>} : memref<4x32xf32, #tpu.memory_space<vmem>>, vector<1x32xf32>,
    %c0_127 = arith.constant 0 : index
    %c0_128 = arith.constant 0 : index
    %458 = vector.load %arg10[%c0_127, %c0_128] : memref<8x64xf32, #tpu.memory_space<vmem>>, vector<8x64xf32>
    %459 = vector.extract_strided_slice %458 {offsets = [0, 0], sizes = [8, 32], strides = [1, 1]} : vector<8x64xf32> to vector<8x32xf32>
    %460 = vector.extract_strided_slice %458 {offsets = [0, 32], sizes = [8, 32], strides = [1, 1]} : vector<8x64xf32> to vector<8x32xf32>
    %461 = arith.addf %459, %460 : vector<8x32xf32>
    %462 = arith.addf %461, %24 : vector<8x32xf32>
    %c0_129 = arith.constant 0 : index
    %c0_130 = arith.constant 0 : index
    %463 = vector.load %arg7[%c0_129, %c0_130] : memref<8x32xf32, #tpu.memory_space<vmem>>, vector<8x32xf32>
    tpu.vector_store %arg7[%c0_129, %c0_130], %462 {strides = array<i32>} : memref<8x32xf32, #tpu.memory_space<vmem>>, vector<8x32xf32>,
    return
  }
}

</mosaic_0001>

<bundles_post_ra>
// kernel: tpu_custom_call.1
= control target key start
LH: loop header
LB: loop body
LE: loop exit
PB: predicated region body
PF: predicated region fallthrough
CT: control target
= control target key end

     0   :  { %15 = vsyncpa [#allocation4], 0  ;;  %s3816_s0 = inlined_call_operand.hbm [shape: f32[8,32], index: 0, kind: input, shape index: {}]   ;;  %s3817_s1 = inlined_call_operand.hbm [shape: f32[32,256], index: 1, kind: input, shape index: {}]   ;;  %s3818_s2 = inlined_call_operand.hbm [shape: f32[64,256], index: 2, kind: input, shape index: {}]   ;;  %s3819_s3 = inlined_call_operand.vmem [shape: f32[1,256], index: 3, kind: input, shape index: {}]   ;;  %s3820_s4 = inlined_call_operand.hbm [shape: f32[64,256], index: 4, kind: input, shape index: {}]   ;;  %s3821_s5 = inlined_call_operand.hbm [shape: f32[64,256], index: 5, kind: input, shape index: {}]   ;;  %s3822_s6 = inlined_call_operand.vmem [shape: f32[1,256], index: 6, kind: input, shape index: {}]   ;;  %s3823_s7 = inlined_call_operand.hbm [shape: f32[8,32], index: 7, kind: output, shape index: {0}]   ;;  %s3824_s8 = inlined_call_operand.hbm [shape: f32[4,32], index: 8, kind: output, shape index: {1}]   ;;  %s3825_s9 = inlined_call_operand.hbm [shape: f32[4,32], index: 9, kind: output, shape index: {2}]  }
   0x1   :  { %16 = vsyncpa [#allocation7], 0 }
   0x2   :  { %17 = vsyncpa [#allocation10], 0 }
   0x3   :  { %18 = vsyncpa [#allocation5], 0 }
   0x4   :  { %19 = vsyncpa [#allocation14], 0  ;;  %s3096_s30 = smov [#allocation6]   ;;  %s2910_s13 = scalar_lea.hbm %s3817_s1, 1024 }
   0x5   :  { %s35_s10 = sshll.u32 %s3096_s30, 4  ;;  %p2911_p0 = scmp.ne.s32.totalorder %s3817_s1, %s2910_s13  ;;  %s36_s10 = int_to_ptr.vmem [resolvable:$true] %s35_s10 }
   0x6   :  { %p2914_p1 = scmp.lt.u32.totalorder %s2910_s13, %s3817_s1 }
   0x8   :  { %p2916_p2 = pnand %p2914_p1, %p2911_p0 }
   0xa   :  { %2919 = shalt.err (!%p2916_p2)
}
   0xb   :  { %s2920_s18 = scalar_lea.vmem %s36_s10, 1024  ;;  %p2925_p4 = scmp.lt.s32.totalorder %s36_s10, %s36_s10 }
   0xc   :  { %p2921_p3 = scmp.ne.s32.totalorder %s36_s10, %s2920_s18  ;;  %p2926_p5 = scmp.lt.s32.totalorder %s2920_s18, %s2920_s18 }
   0xe   :  { %p2927_p6 = por %p2926_p5, %p2925_p4 }
  0x10   :  { %p2928_p7 = pnand %p2927_p6, %p2921_p3 }
  0x12   :  { %2931 = shalt.err (!%p2928_p7)
}
  0x13   :  { %s3097_s19 = smov 256   ;;  %s3098_s20 = smov 16  }
  0x14   :  { %41 = dma.hbm_to_vmem [thread:$0]  %s3817_s1, 1024, %s36_s10, [#allocation7], %s3097_s19, %s3097_s19, %s3098_s20  }
  0x15   :  { %s3099_s23 = smov [#allocation9]   ;;  %s3100_s25 = smov [#allocation3]  }
  0x16   :  { %s61_s24 = sshll.u32 %s3099_s23, 4  ;;  %s26_s26 = sshll.u32 %s3100_s25, 4  ;;  %s62_s24 = int_to_ptr.vmem [resolvable:$true] %s61_s24  ;;  %s27_s26 = int_to_ptr.vmem [resolvable:$true] %s26_s26 }
  0x17   :  { %s2932_s29 = scalar_lea.hbm %s3820_s4, 2048 }
  0x18   :  { %p2933_p8 = scmp.ne.s32.totalorder %s3820_s4, %s2932_s29  ;;  %p2936_p9 = scmp.lt.u32.totalorder %s2932_s29, %s3820_s4 }
  0x1a   :  { %p2938_p10 = pnand %p2936_p9, %p2933_p8 }
  0x1c   :  { %2941 = shalt.err (!%p2938_p10)
}
  0x1d   :  { %s2942_s1 = scalar_lea.vmem %s62_s24, 2048  ;;  %p2947_p12 = scmp.lt.s32.totalorder %s62_s24, %s62_s24 }
  0x1e   :  { %p2943_p11 = scmp.ne.s32.totalorder %s62_s24, %s2942_s1  ;;  %p2948_p13 = scmp.lt.s32.totalorder %s2942_s1, %s2942_s1 }
  0x20   :  { %p2949_p0 = por %p2948_p13, %p2947_p12 }
  0x22   :  { %p2950_p1 = pnand %p2949_p0, %p2943_p11 }
  0x24   :  { %2953 = shalt.err (!%p2950_p1)
}
  0x25   :  { %67 = dma.hbm_to_vmem [thread:$0]  %s3820_s4, 2048, %s62_s24, [#allocation10], %s3097_s19, %s3097_s19, %s3098_s20  }
  0x26   :  { %s2954_s17 = scalar_lea.hbm %s3816_s0, 128 }
  0x27   :  { %p2955_p2 = scmp.ne.s32.totalorder %s3816_s0, %s2954_s17  ;;  %p2958_p3 = scmp.lt.u32.totalorder %s2954_s17, %s3816_s0 }
  0x29   :  { %p2960_p4 = pnand %p2958_p3, %p2955_p2 }
  0x2b   :  { %2963 = shalt.err (!%p2960_p4)
}
  0x2c   :  { %s2964_s25 = scalar_lea.vmem %s27_s26, 128  ;;  %p2969_p6 = scmp.lt.s32.totalorder %s27_s26, %s27_s26 }
  0x2d   :  { %p2965_p5 = scmp.ne.s32.totalorder %s27_s26, %s2964_s25  ;;  %p2970_p7 = scmp.lt.s32.totalorder %s2964_s25, %s2964_s25 }
  0x2f   :  { %p2971_p8 = por %p2970_p7, %p2969_p6 }
  0x31   :  { %p2972_p9 = pnand %p2971_p8, %p2965_p5 }
  0x33   :  { %2975 = shalt.err (!%p2972_p9)
}
  0x34   :  { %29 = dma.hbm_to_vmem [thread:$0]  %s3816_s0, 128, %s27_s26, [#allocation4]  }
  0x35   :  { %s3101_s27 = smov [#allocation8]   ;;  %s3102_s29 = smov [#allocation11]  }
  0x36   :  { %s47_s28 = sshll.u32 %s3101_s27, 4  ;;  %s73_s30 = sshll.u32 %s3102_s29, 4  ;;  %s48_s28 = int_to_ptr.vmem [resolvable:$true] %s47_s28  ;;  %s74_s30 = int_to_ptr.vmem [resolvable:$true] %s73_s30 }
  0x37   :  { %s2976_s13 = scalar_lea.hbm %s3818_s2, 2048 }
  0x38   :  { %p2977_p10 = scmp.ne.s32.totalorder %s3818_s2, %s2976_s13  ;;  %p2980_p11 = scmp.lt.u32.totalorder %s2976_s13, %s3818_s2 }
  0x3a   :  { %p2982_p12 = pnand %p2980_p11, %p2977_p10 }
  0x3c   :  { %2985 = shalt.err (!%p2982_p12)
}
  0x3d   :  { %s2986_s0 = scalar_lea.vmem %s48_s28, 2048  ;;  %p2991_p0 = scmp.lt.s32.totalorder %s48_s28, %s48_s28 }
  0x3e   :  { %p2987_p13 = scmp.ne.s32.totalorder %s48_s28, %s2986_s0  ;;  %p2992_p1 = scmp.lt.s32.totalorder %s2986_s0, %s2986_s0 }
  0x40   :  { %p2993_p2 = por %p2992_p1, %p2991_p0 }
  0x42   :  { %p2994_p3 = pnand %p2993_p2, %p2987_p13 }
  0x44   :  { %2997 = shalt.err (!%p2994_p3)
}
  0x45   :  { %53 = dma.hbm_to_vmem [thread:$0]  %s3818_s2, 2048, %s48_s28, [#allocation7], %s3097_s19, %s3097_s19, %s3098_s20  }
  0x46   :  { %s2998_s21 = scalar_lea.hbm %s3821_s5, 2048 }
  0x47   :  { %p2999_p4 = scmp.ne.s32.totalorder %s3821_s5, %s2998_s21  ;;  %p3002_p5 = scmp.lt.u32.totalorder %s2998_s21, %s3821_s5 }
  0x49   :  { %p3004_p6 = pnand %p3002_p5, %p2999_p4 }
  0x4b   :  { %3007 = shalt.err (!%p3004_p6)
}
  0x4c   :  { %s3008_s24 = scalar_lea.vmem %s74_s30, 2048  ;;  %p3013_p8 = scmp.lt.s32.totalorder %s74_s30, %s74_s30 }
  0x4d   :  { %p3009_p7 = scmp.ne.s32.totalorder %s74_s30, %s3008_s24  ;;  %p3014_p9 = scmp.lt.s32.totalorder %s3008_s24, %s3008_s24 }
  0x4f   :  { %p3015_p10 = por %p3014_p9, %p3013_p8 }
  0x51   :  { %p3016_p11 = pnand %p3015_p10, %p3009_p7 }
  0x53   :  { %3019 = shalt.err (!%p3016_p11)
}
  0x54   :  { %79 = dma.hbm_to_vmem [thread:$0]  %s3821_s5, 2048, %s74_s30, [#allocation10], %s3097_s19, %s3097_s19, %s3098_s20  }
  0x55   :  { %3086 = dma.done.wait [#allocation4], 128  }
  0x56   :  { %3087 = vsyncadd [#allocation4], 4294967168 }
  0x57   :  { %3088 = dma.done.wait [#allocation7], 3072  }
  0x58   :  { %3089 = vsyncadd [#allocation7], 4294964224 }
  0x59   :  { %3090 = dma.done.wait [#allocation10], 4096  }
  0x5a   :  { %3091 = vsyncadd [#allocation10], 4294963200  ;;  %v3103_v0 = vmov 0.0   ;;  %v142_v1 = vld [vmem:[#allocation8 + $0x8] sm:$0xff]  ;;  %v144_v2 = vld [vmem:[#allocation8 + $0x18] sm:$0xff]  ;;  %vm3826_vm0 = vcmask 261120   ;;  %v97_v38 = vlaneseq }
  0x5b   :  { %237 = vmatprep.mubr.f32.mxu0 %v3103_v0  ;;  %320 = vmatprep.mubr.f32.mxu1 %v3103_v0  ;;  %v141_v3 = vld [vmem:[#allocation8] sm:$0xff]  ;;  %v3234_v4 = vpack.c.bf16 %v144_v2, %v142_v1  ;;  %v143_v5 = vld [vmem:[#allocation8 + $0x10] sm:$0xff]  ;;  %v134_v6 = vld [vmem:[#allocation6 + $0x8] sm:$0xff]  ;;  %vm252_vm4 = vcmask 523264   ;;  %vm364_vm5 = vcmask 261127   ;;  %vm366_vm6 = vcmask 523527  }
  0x5c   :  { %v136_v7 = vld [vmem:[#allocation6 + $0x18] sm:$0xff]  ;;  %v3236_v8 = vpack.c.bf16 %v143_v5, %v141_v3  ;;  %v133_v10 = vld [vmem:[#allocation6] sm:$0xff]  ;;  %v135_v11 = vld [vmem:[#allocation6 + $0x10] sm:$0xff]  ;;  %v3280_v39 = vshrl.u32 %v97_v38, 7  ;;  %v98_v43 = vand.u32 127, %v97_v38  ;;  %vm616_vm7 = vcmask 259077  }
  0x5d   :  { %v2423_v9 = vpack.c.bf16 %v136_v7, %v134_v6  ;;  %v146_v12 = vld [vmem:[#allocation8 + $0x28] sm:$0xff]  ;;  %2432 = vmatprep.subr.bf16.mxu1 %v3234_v4  ;;  %v2425_v13 = vpack.c.bf16 %v135_v11, %v133_v10  ;;  %v148_v14 = vld [vmem:[#allocation8 + $0x38] sm:$0xff]  ;;  %v145_v15 = vld [vmem:[#allocation8 + $0x20] sm:$0xff]  ;;  %vm618_vm8 = vcmask 521477   ;;  %vm490_vm9 = vcmask 260102   ;;  %s3106_s29 = smov [#allocation13]  }
  0x5e   :  { %v147_v16 = vld [vmem:[#allocation8 + $0x30] sm:$0xff]  ;;  %2434 = vmatpush1.bf16.msra.mxu1 %v3236_v8  ;;  %v3240_v17 = vpack.c.bf16 %v148_v14, %v146_v12  ;;  %v138_v19 = vld [vmem:[#allocation6 + $0x28] sm:$0xff]  ;;  %v140_v20 = vld [vmem:[#allocation6 + $0x38] sm:$0xff]  ;;  %v161_v40 = vsub.s32 0, %v3280_v39  ;;  %v165_v42 = vsub.s32 1, %v3280_v39  ;;  %v3291_v46 = vadd.s32 128, %v98_v43 }
  0x5f   :  { %2424 = vmatprep.subr.bf16.mxu0 %v2423_v9  ;;  %v3242_v18 = vpack.c.bf16 %v147_v16, %v145_v15  ;;  %v137_v21 = vld [vmem:[#allocation6 + $0x20] sm:$0xff]  ;;  %v2427_v22 = vpack.c.bf16 %v140_v20, %v138_v19  ;;  %v139_v23 = vld [vmem:[#allocation6 + $0x30] sm:$0xff]  ;;  %v150_v24 = vld [vmem:[#allocation8 + $0x48] sm:$0xff]  ;;  %v104_v50 = vand.u32 63, %v98_v43  ;;  %vm492_vm10 = vcmask 522502   ;;  %s2347_s30 = sshll.u32 %s3106_s29, 4  ;;  %s2348_s30 = int_to_ptr.vmem [resolvable:$true] %s2347_s30 }
  0x60   :  { %2426 = vmatpush1.bf16.msra.mxu0 %v2425_v13  ;;  %v152_v25 = vld [vmem:[#allocation8 + $0x58] sm:$0xff]  ;;  %2436 = vmatprep.subr.bf16.mxu1 %v3240_v17  ;;  %v2429_v26 = vpack.c.bf16 %v139_v23, %v137_v21  ;;  %v149_v28 = vld [vmem:[#allocation8 + $0x40] sm:$0xff]  ;;  %v151_v29 = vld [vmem:[#allocation8 + $0x50] sm:$0xff]  ;;  %v111_v52 = vand.u32 63, %v3291_v46  ;;  %vm129_vm3 = vcmp.lt.s32.totalorder %v3291_v46, 192  ;;  %vm3828_vm11 = vcmask 254977   ;;  %p3025_p13 = scmp.lt.s32.totalorder %s2348_s30, %s2348_s30 }
  0x61   :  { %v3245_v27 = vpack.c.bf16 %v152_v25, %v150_v24  ;;  %2428 = vmatprep.subr.bf16.mxu0 %v2427_v22  ;;  %v154_v30 = vld [vmem:[#allocation8 + $0x68] sm:$0xff]  ;;  %v156_v31 = vld [vmem:[#allocation8 + $0x78] sm:$0xff]  ;;  %v3248_v32 = vpack.c.bf16 %v151_v29, %v149_v28  ;;  %v153_v35 = vld [vmem:[#allocation8 + $0x60] sm:$0xff]  ;;  %vm3299_vm1 = vcmp.ge.s32.totalorder %v104_v50, 32  ;;  %vm3827_vm12 = vcmask 517377   ;;  %s3020_s11 = scalar_lea.vmem %s2348_s30, 64 }
  0x62   :  { %2438 = vmatpush1.bf16.msra.mxu1 %v3242_v18  ;;  %v132_v33 = vld [vmem:[#allocation3] sm:$0xff]  ;;  %v3251_v34 = vpack.c.bf16 %v156_v31, %v154_v30  ;;  %v155_v36 = vld [vmem:[#allocation8 + $0x70] sm:$0xff]  ;;  %vm3304_vm2 = vcmp.ge.s32.totalorder %v111_v52, 32  ;;  %vm742_vm13 = vcmask 258052   ;;  %vm744_vm14 = vcmask 520452   ;;  %p3021_p12 = scmp.ne.s32.totalorder %s2348_s30, %s3020_s11  ;;  %p3026_p0 = scmp.lt.s32.totalorder %s3020_s11, %s3020_s11 }
  0x63   :  { %2440 = vmatprep.subr.bf16.mxu1 %v3245_v27  ;;  %v3256_v37 = vpack.c.bf16 %v155_v36, %v153_v35  ;;  %v157_v41 = vld [vmem:[%s3819_s3] sm:$0x3]  ;;  %s3104_s3 = smov 64   ;;  %vm862_vm15 = vcmask 257027  }
  0x64   :  { %2430 = vmatpush1.bf16.msra.mxu0 %v2429_v26  ;;  %v162_v44 = vrot.slane %v157_v41, %v161_v40  ;;  %v166_v45 = vrot.slane %v157_v41, %v165_v42  ;;  %p3027_p1 = por %p3026_p0, %p3025_p13 }
  0x65   :  { %2448 = vmatprep.subr.bf16.mxu0 %v3234_v4 }
  0x66   :  { %2442 = vmatpush1.bf16.msra.mxu1 %v3248_v32  ;;  %p3028_p2 = pnand %p3027_p1, %p3021_p12 }
  0x67   :  { %2375 = vmatmul.mubr.msk.f32.vlgmr.msra.gmra.mrb[0].mxu0 %vm3826_vm0, %v132_v33  ;;  %2444 = vmatprep.subr.bf16.mxu1 %v3251_v34  ;;  %vm864_vm0 = vcmask 519427  }
  0x68   :  { %2450 = vmatpush1.bf16.msra.mxu0 %v3236_v8  ;;  %443 = vmatprep.mubr.f32.mxu0 %v3103_v0 }
  0x69   :  { %2452 = vmatprep.subr.bf16.mxu0 %v3240_v17 }
  0x6a   :  { %2446 = vmatpush1.bf16.msra.mxu1 %v3256_v37 }
  0x6b   :  { %2464 = vmatprep.subr.bf16.mxu1 %v3234_v4 }
  0x6c   :  { %2454 = vmatpush1.bf16.msra.mxu0 %v3242_v18 }
  0x6d   :  { %2456 = vmatprep.subr.bf16.mxu0 %v3245_v27  ;;  %321 = vmatmul.mubr.f32.vlgmr.msra.gmra.mrb[0].mxu1 %v3103_v0 }
  0x6e   :  { %2466 = vmatpush1.bf16.msra.mxu1 %v3236_v8  ;;  %569 = vmatprep.mubr.f32.mxu1 %v3103_v0 }
  0x6f   :  { %2468 = vmatprep.subr.bf16.mxu1 %v3240_v17 }
  0x70   :  { %2458 = vmatpush1.bf16.msra.mxu0 %v3248_v32 }
  0x71   :  { %2460 = vmatprep.subr.bf16.mxu0 %v3251_v34 }
  0x72   :  { %2470 = vmatpush1.bf16.msra.mxu1 %v3242_v18 }
  0x73   :  { %2472 = vmatprep.subr.bf16.mxu1 %v3245_v27 }
  0x74   :  { %2462 = vmatpush1.bf16.msra.mxu0 %v3256_v37 }
  0x75   :  { %2480 = vmatprep.subr.bf16.mxu0 %v3234_v4 }
  0x76   :  { %2474 = vmatpush1.bf16.msra.mxu1 %v3248_v32 }
  0x77   :  { %2476 = vmatprep.subr.bf16.mxu1 %v3251_v34 }
  0x7a   :  { %2478 = vmatpush1.bf16.msra.mxu1 %v3256_v37 }
  0x7b   :  { %2496 = vmatprep.subr.bf16.mxu1 %v3234_v4 }
 0x13a   :  { %v239_v47 = vpop.f32.mrb[0].mxu0 }
 0x13b   :  { %v3293_v48 = vadd.f32 %v239_v47, %v162_v44  ;;  %v241_v49 = vpop.f32.mrb[1].mxu0 }
 0x13c   :  { %v3295_v51 = vadd.f32 %v241_v49, %v166_v45 }
 0x13d   :  { %v246_v53 = vrot.slane %v3293_v48, 1  ;;  %v368_v24 = vrot.slane %v3293_v48, 3 }
 0x13e   :  { %v247_v55 = vrot.slane %v3295_v51, 1  ;;  %v369_v25 = vrot.slane %v3295_v51, 3 }
 0x13f   :  { %v3311_v60 = vsel %vm3299_vm1, %v3293_v48, %v246_v53  ;;  %v3343_v30 = vsel %vm3299_vm1, %v3293_v48, %v368_v24 }
 0x140   :  { %v322_v57 = vpop.f32.mrb[0].mxu1  ;;  %v3317_v63 = vsel %vm3304_vm2, %v3295_v51, %v247_v55  ;;  %v3349_v35 = vsel %vm3304_vm2, %v3295_v51, %v369_v25 }
 0x141   :  { %v329_v58 = vrot.slane %v322_v57, 1  ;;  %v324_v59 = vpop.f32.mrb[1].mxu1 }
 0x142   :  { %v330_v61 = vrot.slane %v324_v59, 1 }
 0x143   :  { %v333_v62 = vadd.f32 %v329_v58, %v3311_v60 }
 0x144   :  { %v334_v1 = vadd.f32 %v330_v61, %v3317_v63 }
 0x145   :  { %v2376_v2 = vmul.f32 -1.442695, %v333_v62 }
 0x146   :  { %v2377_v3 = vmul.f32 -1.442695, %v334_v1 }
 0x147   :  { %2717 = vpow2.f32 %v2376_v2 }
 0x148   :  { %2719 = vpow2.f32 %v2377_v3 }
 0x149   :  { %2721 = vtanh.f32 %v334_v1 }
 0x151   :  { %v2718_v5 = vpop.eup %2717 }
 0x152   :  { %v2720_v6 = vpop.eup %2719  ;;  %v341_v7 = vadd.f32 1.0, %v2718_v5  ;;  %v494_v5 = vrot.slane %v3293_v48, 5 }
 0x153   :  { %v342_v9 = vadd.f32 1.0, %v2720_v6  ;;  %v2722_v10 = vpop.eup %2721  ;;  %v495_v6 = vrot.slane %v3295_v51, 5 }
 0x155   :  { %2723 = vrcp.f32 %v342_v9 }
 0x156   :  { %2725 = vrcp.f32 %v341_v7 }
 0x15f   :  { %v2724_v11 = vpop.eup %2723 }
 0x160   :  { %v2726_v12 = vpop.eup %2725  ;;  %v350_v13 = vsel %vm129_vm3, %v2722_v10, %v2724_v11  ;;  %v3374_v11 = vsel %vm3299_vm1, %v3293_v48, %v494_v5 }
 0x161   :  { %v352_v14 = vmul.f32 %v2726_v12, %v350_v13  ;;  %v351_v15 = vmul.f32 0.0, %v2726_v12 }
 0x163   :  { %354 = vrot.lane.b32.xlu0 %v352_v14, %s3104_s3  ;;  %v3380_v14 = vsel %vm3304_vm2, %v3295_v51, %v495_v6 }
 0x1d5   :  { %v355_v16 = vpop.permute.xlu0 %354 }
 0x1d6   :  { %v357_v19 = vadd.f32 %v355_v16, %v351_v15 }
 0x1d8   :  { %2727 = vtanh.f32 %v357_v19  ;;  %v475_v50 = vrot.slane %v357_v19, 1 }
 0x1e2   :  { %v2728_v20 = vpop.eup %2727 }
 0x1e3   :  { %v3324_v21 = vmul.f32 %v2728_v20, %v350_v13 }
 0x1e5   :  { %v374_v22 = vrot.slane %v3324_v21, 7 }
 0x1e7   :  { %375 = vrot.lane.b32.xlu0 %v374_v22, %s3104_s3 }
 0x259   :  { %v376_v23 = vpop.permute.xlu0 %375 }
 0x25a   :  { %2378 = vmatmul.mubr.msk.f32.vlgmr.msra.gmra.mrb[2].mxu0 %vm252_vm4, %v376_v23 }
 0x25b   :  { %2482 = vmatpush1.bf16.msra.mxu0 %v3236_v8  ;;  %695 = vmatprep.mubr.f32.mxu0 %v3103_v0 }
 0x25c   :  { %2484 = vmatprep.subr.bf16.mxu0 %v3240_v17 }
 0x25f   :  { %2486 = vmatpush1.bf16.msra.mxu0 %v3242_v18 }
 0x260   :  { %2488 = vmatprep.subr.bf16.mxu0 %v3245_v27 }
 0x263   :  { %2490 = vmatpush1.bf16.msra.mxu0 %v3248_v32 }
 0x264   :  { %2492 = vmatprep.subr.bf16.mxu0 %v3251_v34 }
 0x267   :  { %2494 = vmatpush1.bf16.msra.mxu0 %v3256_v37 }
 0x268   :  { %2512 = vmatprep.subr.bf16.mxu0 %v3234_v4 }
 0x32d   :  { %v445_v26 = vpop.f32.mrb[2].mxu0 }
 0x32e   :  { %v452_v28 = vrot.slane %v445_v26, 2  ;;  %v447_v29 = vpop.f32.mrb[3].mxu0 }
 0x32f   :  { %v453_v31 = vrot.slane %v447_v29, 2 }
 0x330   :  { %v456_v33 = vadd.f32 %v452_v28, %v3343_v30 }
 0x331   :  { %v457_v36 = vadd.f32 %v453_v31, %v3349_v35 }
 0x332   :  { %v2379_v38 = vmul.f32 -1.442695, %v456_v33 }
 0x333   :  { %v2380_v41 = vmul.f32 -1.442695, %v457_v36 }
 0x334   :  { %2729 = vpow2.f32 %v2379_v38 }
 0x335   :  { %2731 = vpow2.f32 %v2380_v41 }
 0x336   :  { %2733 = vtanh.f32 %v457_v36 }
 0x33e   :  { %v2730_v43 = vpop.eup %2729 }
 0x33f   :  { %v2732_v44 = vpop.eup %2731  ;;  %v464_v45 = vadd.f32 1.0, %v2730_v43 }
 0x340   :  { %v465_v47 = vadd.f32 1.0, %v2732_v44  ;;  %v2734_v49 = vpop.eup %2733 }
 0x341   :  { %2735 = vrcp.f32 %v464_v45 }
 0x342   :  { %2737 = vrcp.f32 %v465_v47 }
 0x34b   :  { %v2736_v52 = vpop.eup %2735 }
 0x34c   :  { %v2738_v53 = vpop.eup %2737  ;;  %v477_v55 = vmul.f32 %v2736_v52, %v475_v50  ;;  %v621_v50 = vrot.slane %v3295_v51, 7 }
 0x34d   :  { %v473_v57 = vsel %vm129_vm3, %v2734_v49, %v2738_v53  ;;  %v620_v49 = vrot.slane %v3293_v48, 7 }
 0x34e   :  { %v478_v58 = vmul.f32 %v2736_v52, %v473_v57 }
 0x350   :  { %480 = vrot.lane.b32.xlu1 %v478_v58, %s3104_s3 }
 0x3c2   :  { %v481_v59 = vpop.permute.xlu1 %480 }
 0x3c3   :  { %v483_v61 = vadd.f32 %v481_v59, %v477_v55 }
 0x3c5   :  { %2739 = vtanh.f32 %v483_v61  ;;  %v601_v26 = vrot.slane %v483_v61, 1  ;;  %v3411_v61 = vsel %vm3304_vm2, %v3295_v51, %v621_v50 }
 0x3cf   :  { %v2740_v62 = vpop.eup %2739 }
 0x3d0   :  { %v3355_v1 = vmul.f32 %v2740_v62, %v473_v57  ;;  %v3405_v57 = vsel %vm3299_vm1, %v3293_v48, %v620_v49 }
 0x3d2   :  { %v500_v2 = vrot.slane %v3355_v1, 6 }
 0x3d4   :  { %501 = vrot.lane.b32.xlu1 %v500_v2, %s3104_s3 }
 0x446   :  { %v502_v3 = vpop.permute.xlu1 %501 }
 0x447   :  { %2381 = vmatmul.mubr.msk.f32.vlgmr.msra.gmra.mrb[2].mxu1 %vm252_vm4, %v502_v3 }
 0x448   :  { %2498 = vmatpush1.bf16.msra.mxu1 %v3236_v8  ;;  %815 = vmatprep.mubr.f32.mxu1 %v3103_v0 }
 0x449   :  { %2500 = vmatprep.subr.bf16.mxu1 %v3240_v17 }
 0x44c   :  { %2502 = vmatpush1.bf16.msra.mxu1 %v3242_v18 }
 0x44d   :  { %2504 = vmatprep.subr.bf16.mxu1 %v3245_v27 }
 0x450   :  { %2506 = vmatpush1.bf16.msra.mxu1 %v3248_v32 }
 0x451   :  { %2508 = vmatprep.subr.bf16.mxu1 %v3251_v34 }
 0x454   :  { %2510 = vmatpush1.bf16.msra.mxu1 %v3256_v37 }
 0x455   :  { %2528 = vmatprep.subr.bf16.mxu1 %v3234_v4 }
 0x51a   :  { %v571_v7 = vpop.f32.mrb[2].mxu1 }
 0x51b   :  { %v578_v9 = vrot.slane %v571_v7, 3  ;;  %v573_v10 = vpop.f32.mrb[3].mxu1 }
 0x51c   :  { %v579_v12 = vrot.slane %v573_v10, 3 }
 0x51d   :  { %v582_v13 = vadd.f32 %v578_v9, %v3374_v11 }
 0x51e   :  { %v583_v15 = vadd.f32 %v579_v12, %v3380_v14 }
 0x51f   :  { %v2382_v16 = vmul.f32 -1.442695, %v582_v13 }
 0x520   :  { %v2383_v19 = vmul.f32 -1.442695, %v583_v15 }
 0x521   :  { %2741 = vpow2.f32 %v2382_v16 }
 0x522   :  { %2743 = vpow2.f32 %v2383_v19 }
 0x523   :  { %2745 = vtanh.f32 %v583_v15 }
 0x52b   :  { %v2742_v20 = vpop.eup %2741 }
 0x52c   :  { %v2744_v22 = vpop.eup %2743  ;;  %v590_v23 = vadd.f32 1.0, %v2742_v20 }
 0x52d   :  { %v591_v24 = vadd.f32 1.0, %v2744_v22  ;;  %v2746_v25 = vpop.eup %2745 }
 0x52e   :  { %2747 = vrcp.f32 %v590_v23 }
 0x52f   :  { %2749 = vrcp.f32 %v591_v24 }
 0x538   :  { %v2748_v28 = vpop.eup %2747 }
 0x539   :  { %v2750_v29 = vpop.eup %2749  ;;  %v603_v31 = vmul.f32 %v2748_v28, %v601_v26 }
 0x53a   :  { %v599_v33 = vsel %vm129_vm3, %v2746_v25, %v2750_v29 }
 0x53b   :  { %v604_v36 = vmul.f32 %v2748_v28, %v599_v33 }
 0x53d   :  { %606 = vrot.lane.b32.xlu0 %v604_v36, %s3104_s3 }
 0x5af   :  { %v607_v38 = vpop.permute.xlu0 %606 }
 0x5b0   :  { %v609_v41 = vadd.f32 %v607_v38, %v603_v31 }
 0x5b2   :  { %2751 = vtanh.f32 %v609_v41  ;;  %v727_v9 = vrot.slane %v609_v41, 1 }
 0x5bc   :  { %v2752_v43 = vpop.eup %2751 }
 0x5bd   :  { %v3386_v44 = vmul.f32 %v2752_v43, %v599_v33 }
 0x5bf   :  { %v626_v45 = vrot.slane %v3386_v44, 5 }
 0x5c1   :  { %627 = vrot.lane.b32.xlu1 %v626_v45, %s3104_s3 }
 0x633   :  { %v628_v47 = vpop.permute.xlu1 %627 }
 0x634   :  { %2384 = vmatmul.mubr.msk.f32.vlgmr.msra.gmra.mrb[4].mxu0 %vm252_vm4, %v628_v47 }
 0x635   :  { %2514 = vmatpush1.bf16.msra.mxu0 %v3236_v8  ;;  %935 = vmatprep.mubr.f32.mxu0 %v3103_v0 }
 0x636   :  { %2516 = vmatprep.subr.bf16.mxu0 %v3240_v17 }
 0x639   :  { %2518 = vmatpush1.bf16.msra.mxu0 %v3242_v18 }
 0x63a   :  { %2520 = vmatprep.subr.bf16.mxu0 %v3245_v27 }
 0x63d   :  { %2522 = vmatpush1.bf16.msra.mxu0 %v3248_v32 }
 0x63e   :  { %2524 = vmatprep.subr.bf16.mxu0 %v3251_v34 }
 0x641   :  { %2526 = vmatpush1.bf16.msra.mxu0 %v3256_v37 }
 0x642   :  { %2544 = vmatprep.subr.bf16.mxu0 %v3234_v4 }
 0x707   :  { %v697_v52 = vpop.f32.mrb[4].mxu0 }
 0x708   :  { %v704_v53 = vrot.slane %v697_v52, 4  ;;  %v699_v55 = vpop.f32.mrb[5].mxu0 }
 0x709   :  { %v705_v58 = vrot.slane %v699_v55, 4 }
 0x70a   :  { %v708_v59 = vadd.f32 %v704_v53, %v3405_v57 }
 0x70b   :  { %v709_v4 = vadd.f32 %v705_v58, %v3411_v61 }
 0x70c   :  { %v2385_v62 = vmul.f32 -1.442695, %v708_v59 }
 0x70d   :  { %v2386_v2 = vmul.f32 -1.442695, %v709_v4 }
 0x70e   :  { %2753 = vpow2.f32 %v2385_v62 }
 0x70f   :  { %2755 = vpow2.f32 %v2386_v2 }
 0x710   :  { %2757 = vtanh.f32 %v709_v4 }
 0x718   :  { %v2754_v3 = vpop.eup %2753 }
 0x719   :  { %v2756_v5 = vpop.eup %2755  ;;  %v716_v6 = vadd.f32 1.0, %v2754_v3 }
 0x71a   :  { %v717_v7 = vadd.f32 1.0, %v2756_v5  ;;  %v2758_v48 = vpop.eup %2757 }
 0x71b   :  { %2759 = vrcp.f32 %v716_v6 }
 0x71c   :  { %2761 = vrcp.f32 %v717_v7 }
 0x725   :  { %v2760_v10 = vpop.eup %2759 }
 0x726   :  { %v2762_v12 = vpop.eup %2761  ;;  %v729_v13 = vmul.f32 %v2760_v10, %v727_v9 }
 0x727   :  { %v725_v51 = vsel %vm129_vm3, %v2758_v48, %v2762_v12 }
 0x728   :  { %v730_v15 = vmul.f32 %v2760_v10, %v725_v51 }
 0x72a   :  { %732 = vrot.lane.b32.xlu0 %v730_v15, %s3104_s3 }
 0x79c   :  { %v733_v16 = vpop.permute.xlu0 %732 }
 0x79d   :  { %v735_v19 = vadd.f32 %v733_v16, %v729_v13 }
 0x79f   :  { %2763 = vtanh.f32 %v735_v19  ;;  %v847_v50 = vrot.slane %v735_v19, 1 }
 0x7a9   :  { %v2764_v20 = vpop.eup %2763 }
 0x7aa   :  { %v3417_v22 = vmul.f32 %v2764_v20, %v725_v51 }
 0x7ac   :  { %v746_v23 = vrot.slane %v3417_v22, 4 }
 0x7ae   :  { %747 = vrot.lane.b32.xlu1 %v746_v23, %s3104_s3 }
 0x820   :  { %v748_v24 = vpop.permute.xlu1 %747 }
 0x821   :  { %2387 = vmatmul.mubr.msk.f32.vlgmr.msra.gmra.mrb[4].mxu1 %vm252_vm4, %v748_v24 }
 0x822   :  { %2530 = vmatpush1.bf16.msra.mxu1 %v3236_v8  ;;  %1055 = vmatprep.mubr.f32.mxu1 %v3103_v0 }
 0x823   :  { %2532 = vmatprep.subr.bf16.mxu1 %v3240_v17 }
 0x826   :  { %2534 = vmatpush1.bf16.msra.mxu1 %v3242_v18 }
 0x827   :  { %2536 = vmatprep.subr.bf16.mxu1 %v3245_v27 }
 0x82a   :  { %2538 = vmatpush1.bf16.msra.mxu1 %v3248_v32 }
 0x82b   :  { %2540 = vmatprep.subr.bf16.mxu1 %v3251_v34 }
 0x82e   :  { %2542 = vmatpush1.bf16.msra.mxu1 %v3256_v37 }
 0x8f4   :  { %v817_v25 = vpop.f32.mrb[4].mxu1 }
 0x8f5   :  { %v824_v26 = vrot.slane %v817_v25, 5  ;;  %v819_v28 = vpop.f32.mrb[5].mxu1 }
 0x8f6   :  { %v825_v29 = vrot.slane %v819_v28, 5 }
 0x8f7   :  { %v828_v31 = vadd.f32 %v824_v26, %v3311_v60 }
 0x8f8   :  { %v829_v33 = vadd.f32 %v825_v29, %v3317_v63 }
 0x8f9   :  { %v2388_v36 = vmul.f32 -1.442695, %v828_v31 }
 0x8fa   :  { %v2389_v38 = vmul.f32 -1.442695, %v829_v33 }
 0x8fb   :  { %2765 = vpow2.f32 %v2388_v36 }
 0x8fc   :  { %2767 = vpow2.f32 %v2389_v38 }
 0x8fd   :  { %2769 = vtanh.f32 %v829_v33 }
 0x905   :  { %v2766_v41 = vpop.eup %2765 }
 0x906   :  { %v2768_v43 = vpop.eup %2767  ;;  %v836_v45 = vadd.f32 1.0, %v2766_v41 }
 0x907   :  { %v837_v47 = vadd.f32 1.0, %v2768_v43  ;;  %v2770_v49 = vpop.eup %2769 }
 0x908   :  { %2771 = vrcp.f32 %v836_v45 }
 0x909   :  { %2773 = vrcp.f32 %v837_v47 }
 0x912   :  { %v2772_v52 = vpop.eup %2771 }
 0x913   :  { %v2774_v53 = vpop.eup %2773  ;;  %v849_v55 = vmul.f32 %v2772_v52, %v847_v50 }
 0x914   :  { %v845_v60 = vsel %vm129_vm3, %v2770_v49, %v2774_v53 }
 0x915   :  { %v850_v63 = vmul.f32 %v2772_v52, %v845_v60 }
 0x917   :  { %852 = vrot.lane.b32.xlu0 %v850_v63, %s3104_s3 }
 0x989   :  { %v853_v58 = vpop.permute.xlu0 %852 }
 0x98a   :  { %v855_v59 = vadd.f32 %v853_v58, %v849_v55 }
 0x98c   :  { %2775 = vtanh.f32 %v855_v59 }
 0x996   :  { %v2776_v4 = vpop.eup %2775 }
 0x997   :  { %v3435_v62 = vmul.f32 %v2776_v4, %v845_v60 }
 0x999   :  { %v866_v2 = vrot.slane %v3435_v62, 3 }
 0x99b   :  { %867 = vrot.lane.b32.xlu1 %v866_v2, %s3104_s3 }
 0xa0d   :  { %v868_v3 = vpop.permute.xlu1 %867 }
 0xa0e   :  { %2390 = vmatmul.mubr.msk.f32.vlgmr.msra.gmra.mrb[6].mxu0 %vm252_vm4, %v868_v3 }
 0xa0f   :  { %2546 = vmatpush1.bf16.msra.mxu0 %v3236_v8  ;;  %1175 = vmatprep.mubr.f32.mxu0 %v3103_v0 }
 0xa10   :  { %2548 = vmatprep.subr.bf16.mxu0 %v3240_v17 }
 0xa13   :  { %2550 = vmatpush1.bf16.msra.mxu0 %v3242_v18 }
 0xa14   :  { %2552 = vmatprep.subr.bf16.mxu0 %v3245_v27 }
 0xa17   :  { %2554 = vmatpush1.bf16.msra.mxu0 %v3248_v32 }
 0xa18   :  { %2556 = vmatprep.subr.bf16.mxu0 %v3251_v34 }
 0xa1b   :  { %2558 = vmatpush1.bf16.msra.mxu0 %v3256_v37  ;;  %v967_v37 = vrot.slane %v855_v59, 1 }
 0xae1   :  { %v937_v5 = vpop.f32.mrb[6].mxu0 }
 0xae2   :  { %v944_v6 = vrot.slane %v937_v5, 6  ;;  %v939_v7 = vpop.f32.mrb[7].mxu0 }
 0xae3   :  { %v945_v48 = vrot.slane %v939_v7, 6 }
 0xae4   :  { %v948_v8 = vadd.f32 %v944_v6, %v3343_v30 }
 0xae5   :  { %v949_v9 = vadd.f32 %v945_v48, %v3349_v35 }
 0xae6   :  { %v2391_v10 = vmul.f32 -1.442695, %v948_v8 }
 0xae7   :  { %v2392_v17 = vmul.f32 -1.442695, %v949_v9 }
 0xae8   :  { %2777 = vpow2.f32 %v2391_v10 }
 0xae9   :  { %2779 = vpow2.f32 %v2392_v17 }
 0xaea   :  { %2781 = vtanh.f32 %v949_v9 }
 0xaf2   :  { %v2778_v18 = vpop.eup %2777 }
 0xaf3   :  { %v2780_v27 = vpop.eup %2779  ;;  %v956_v12 = vadd.f32 1.0, %v2778_v18 }
 0xaf4   :  { %v957_v32 = vadd.f32 1.0, %v2780_v27  ;;  %v2782_v34 = vpop.eup %2781 }
 0xaf5   :  { %2783 = vrcp.f32 %v956_v12 }
 0xaf6   :  { %2785 = vrcp.f32 %v957_v32 }
 0xaff   :  { %v2784_v13 = vpop.eup %2783 }
 0xb00   :  { %v2786_v51 = vpop.eup %2785  ;;  %v969_v15 = vmul.f32 %v2784_v13, %v967_v37 }
 0xb01   :  { %v965_v30 = vsel %vm129_vm3, %v2782_v34, %v2786_v51  ;;  %v1238_v51 = vld [vmem:[#allocation9 + $0x18] sm:$0xff] }
 0xb02   :  { %v970_v35 = vmul.f32 %v2784_v13, %v965_v30  ;;  %v1236_v13 = vld [vmem:[#allocation9 + $0x8] sm:$0xff] }
 0xb04   :  { %972 = vrot.lane.b32.xlu0 %v970_v35, %s3104_s3  ;;  %v1237_v35 = vld [vmem:[#allocation9 + $0x10] sm:$0xff] }
 0xb76   :  { %v973_v16 = vpop.permute.xlu0 %972 }
 0xb77   :  { %v975_v19 = vadd.f32 %v973_v16, %v969_v15  ;;  %v1235_v15 = vld [vmem:[#allocation9] sm:$0xff]  ;;  %v1252_v16 = vld [vmem:[#allocation11 + $0x8] sm:$0xff] }
 0xb79   :  { %2787 = vtanh.f32 %v975_v19  ;;  %v1087_v52 = vrot.slane %v975_v19, 1  ;;  %v1254_v19 = vld [vmem:[#allocation11 + $0x18] sm:$0xff] }
 0xb83   :  { %v2788_v20 = vpop.eup %2787 }
 0xb84   :  { %v3453_v23 = vmul.f32 %v2788_v20, %v965_v30  ;;  %v2559_v30 = vpack.c.bf16 %v1238_v51, %v1236_v13  ;;  %v2561_v20 = vpack.c.bf16 %v1237_v35, %v1235_v15  ;;  %v1267_v35 = vld [vmem:[%s3822_s6] sm:$0x3]  ;;  %s3105_s6 = smov 32  }
 0xb86   :  { %v986_v24 = vrot.slane %v3453_v23, 2  ;;  %2560 = vmatprep.subr.bf16.mxu1 %v2559_v30 }
 0xb88   :  { %987 = vrot.lane.b32.xlu1 %v986_v24, %s3104_s3  ;;  %v3488_v24 = vpack.c.bf16 %v1254_v19, %v1252_v16  ;;  %v1272_v16 = vrot.slane %v1267_v35, %v161_v40  ;;  %v1276_v19 = vrot.slane %v1267_v35, %v165_v42 }
 0xb8a   :  { %2576 = vmatprep.subr.bf16.mxu0 %v3488_v24 }
 0xbfa   :  { %v988_v25 = vpop.permute.xlu1 %987 }
 0xbfb   :  { %2393 = vmatmul.mubr.msk.f32.vlgmr.msra.gmra.mrb[6].mxu1 %vm252_vm4, %v988_v25  ;;  %v1251_v25 = vld [vmem:[#allocation11] sm:$0xff] }
 0xbfc   :  { %1346 = vmatprep.mubr.f32.mxu1 %v3103_v0  ;;  %2562 = vmatpush1.bf16.msra.mxu1 %v2561_v20 }
 0xcce   :  { %v1057_v26 = vpop.f32.mrb[6].mxu1 }
 0xccf   :  { %v1064_v28 = vrot.slane %v1057_v26, 7  ;;  %v1059_v29 = vpop.f32.mrb[7].mxu1  ;;  %v1253_v26 = vld [vmem:[#allocation11 + $0x10] sm:$0xff] }
 0xcd0   :  { %v1065_v31 = vrot.slane %v1059_v29, 7  ;;  %v3490_v29 = vpack.c.bf16 %v1253_v26, %v1251_v25 }
 0xcd1   :  { %v1068_v33 = vadd.f32 %v1064_v28, %v3374_v11  ;;  %v1240_v28 = vld [vmem:[#allocation9 + $0x28] sm:$0xff] }
 0xcd2   :  { %v1069_v36 = vadd.f32 %v1065_v31, %v3380_v14  ;;  %v1242_v31 = vld [vmem:[#allocation9 + $0x38] sm:$0xff] }
 0xcd3   :  { %v2394_v38 = vmul.f32 -1.442695, %v1068_v33  ;;  %v1239_v33 = vld [vmem:[#allocation9 + $0x20] sm:$0xff] }
 0xcd4   :  { %v2395_v41 = vmul.f32 -1.442695, %v1069_v36 }
 0xcd5   :  { %2789 = vpow2.f32 %v2394_v38  ;;  %v2563_v38 = vpack.c.bf16 %v1242_v31, %v1240_v28 }
 0xcd6   :  { %2791 = vpow2.f32 %v2395_v41 }
 0xcd7   :  { %2793 = vtanh.f32 %v1069_v36  ;;  %v1241_v36 = vld [vmem:[#allocation9 + $0x30] sm:$0xff]  ;;  %2564 = vmatprep.subr.bf16.mxu1 %v2563_v38 }
 0xcd8   :  { %v2565_v41 = vpack.c.bf16 %v1241_v36, %v1239_v33 }
 0xcda   :  { %2566 = vmatpush1.bf16.msra.mxu1 %v2565_v41 }
 0xcdf   :  { %v2790_v43 = vpop.eup %2789 }
 0xce0   :  { %v2792_v45 = vpop.eup %2791  ;;  %v1076_v47 = vadd.f32 1.0, %v2790_v43  ;;  %v1256_v43 = vld [vmem:[#allocation11 + $0x28] sm:$0xff] }
 0xce1   :  { %v1077_v49 = vadd.f32 1.0, %v2792_v45  ;;  %v2794_v50 = vpop.eup %2793  ;;  %v1258_v45 = vld [vmem:[#allocation11 + $0x38] sm:$0xff] }
 0xce2   :  { %2795 = vrcp.f32 %v1076_v47  ;;  %v3494_v47 = vpack.c.bf16 %v1258_v45, %v1256_v43 }
 0xce3   :  { %2797 = vrcp.f32 %v1077_v49  ;;  %v1257_v49 = vld [vmem:[#allocation11 + $0x30] sm:$0xff] }
 0xcec   :  { %v2796_v53 = vpop.eup %2795 }
 0xced   :  { %v2798_v55 = vpop.eup %2797  ;;  %v1089_v60 = vmul.f32 %v2796_v53, %v1087_v52 }
 0xcee   :  { %v1085_v11 = vsel %vm129_vm3, %v2794_v50, %v2798_v55  ;;  %v1244_v55 = vld [vmem:[#allocation9 + $0x48] sm:$0xff] }
 0xcef   :  { %v1090_v14 = vmul.f32 %v2796_v53, %v1085_v11 }
 0xcf1   :  { %1092 = vrot.lane.b32.xlu0 %v1090_v14, %s3104_s3 }
 0xd63   :  { %v1093_v63 = vpop.permute.xlu0 %1092 }
 0xd64   :  { %v1095_v58 = vadd.f32 %v1093_v63, %v1089_v60  ;;  %v1246_v60 = vld [vmem:[#allocation9 + $0x58] sm:$0xff]  ;;  %v1243_v63 = vld [vmem:[#allocation9 + $0x40] sm:$0xff] }
 0xd65   :  { %v2567_v14 = vpack.c.bf16 %v1246_v60, %v1244_v55 }
 0xd66   :  { %2799 = vtanh.f32 %v1095_v58  ;;  %v1201_v12 = vrot.slane %v1095_v58, 1 }
 0xd67   :  { %2568 = vmatprep.subr.bf16.mxu1 %v2567_v14 }
 0xd70   :  { %v2800_v59 = vpop.eup %2799 }
 0xd71   :  { %v1097_v4 = vmul.f32 %v2800_v59, %v1085_v11  ;;  %v1260_v59 = vld [vmem:[#allocation11 + $0x48] sm:$0xff] }
 0xd73   :  { %v1106_v2 = vrot.slane %v1097_v4, 1 }
 0xd75   :  { %1107 = vrot.lane.b32.xlu1 %v1106_v2, %s3104_s3  ;;  %v1259_v2 = vld [vmem:[#allocation11 + $0x40] sm:$0xff] }
 0xd79   :  { %361 = vrot.lane.b32.xlu1 %v3324_v21, %s3104_s3 }
 0xd7d   :  { %613 = vrot.lane.b32.xlu1 %v3386_v44, %s3104_s3 }
 0xd81   :  { %859 = vrot.lane.b32.xlu1 %v3435_v62, %s3104_s3 }
 0xd85   :  { %1099 = vrot.lane.b32.xlu1 %v1097_v4, %s3104_s3  ;;  %v1262_v4 = vld [vmem:[#allocation11 + $0x58] sm:$0xff] }
 0xde7   :  { %v1108_v3 = vpop.permute.xlu1 %1107 }
 0xde8   :  { %2396 = vmatmul.mubr.msk.f32.vlgmr.msra.gmra.mrb[8].mxu0 %vm252_vm4, %v1108_v3  ;;  %v1261_v3 = vld [vmem:[#allocation11 + $0x50] sm:$0xff] }
 0xde9   :  { %1425 = vmatprep.mubr.f32.mxu0 %v3103_v0  ;;  %2578 = vmatpush1.bf16.msra.mxu0 %v3490_v29 }
 0xdea   :  { %2580 = vmatprep.subr.bf16.mxu0 %v3494_v47 }
 0xdeb   :  { %v362_v5 = vpop.permute.xlu1 %361 }
 0xdec   :  { %365 = vst.msk [vmem:[#allocation2 - $0x7] sm:$0x80] %vm364_vm5, %v362_v5 }
 0xded   :  { %367 = vst.msk [vmem:[#allocation2] sm:$0x80] %vm366_vm6, %v362_v5 }
 0xdef   :  { %v614_v21 = vpop.permute.xlu1 %613 }
 0xdf0   :  { %617 = vst.msk [vmem:[#allocation2 - $0x3] sm:$0x20] %vm616_vm7, %v614_v21 }
 0xdf1   :  { %619 = vst.msk [vmem:[#allocation2] sm:$0x20] %vm618_vm8, %v614_v21  ;;  %v3509_v21 = vpack.c.bf16 %v1261_v3, %v1259_v2 }
 0xdf3   :  { %v860_v52 = vpop.permute.xlu1 %859 }
 0xebb   :  { %v1177_v44 = vpop.f32.mrb[8].mxu0 }
 0xebc   :  { %v1182_v62 = vadd.f32 %v1177_v44, %v3405_v57  ;;  %v1179_v6 = vpop.f32.mrb[9].mxu0  ;;  %v1248_v44 = vld [vmem:[#allocation9 + $0x68] sm:$0xff] }
 0xebd   :  { %v1183_v7 = vadd.f32 %v1179_v6, %v3411_v61  ;;  %v1100_v6 = vpop.permute.xlu1 %1099 }
 0xebe   :  { %v2397_v48 = vmul.f32 -1.442695, %v1182_v62  ;;  %v1250_v62 = vld [vmem:[#allocation9 + $0x78] sm:$0xff] }
 0xebf   :  { %v2398_v8 = vmul.f32 -1.442695, %v1183_v7 }
 0xec0   :  { %2801 = vpow2.f32 %v2397_v48  ;;  %v1247_v48 = vld [vmem:[#allocation9 + $0x60] sm:$0xff] }
 0xec1   :  { %2803 = vpow2.f32 %v2398_v8  ;;  %v1249_v8 = vld [vmem:[#allocation9 + $0x70] sm:$0xff] }
 0xec2   :  { %2805 = vtanh.f32 %v1183_v7  ;;  %v2571_v7 = vpack.c.bf16 %v1250_v62, %v1248_v44 }
 0xeca   :  { %v2802_v9 = vpop.eup %2801 }
 0xecb   :  { %v2804_v10 = vpop.eup %2803  ;;  %v1190_v17 = vadd.f32 1.0, %v2802_v9  ;;  %v2573_v9 = vpack.c.bf16 %v1249_v8, %v1247_v48 }
 0xecc   :  { %v1191_v18 = vadd.f32 1.0, %v2804_v10  ;;  %v2806_v27 = vpop.eup %2805  ;;  %v1264_v10 = vld [vmem:[#allocation11 + $0x68] sm:$0xff] }
 0xecd   :  { %2807 = vrcp.f32 %v1190_v17  ;;  %v1266_v17 = vld [vmem:[#allocation11 + $0x78] sm:$0xff] }
 0xece   :  { %2809 = vrcp.f32 %v1191_v18  ;;  %v3517_v18 = vpack.c.bf16 %v1266_v17, %v1264_v10 }
 0xed7   :  { %v2808_v32 = vpop.eup %2807 }
 0xed8   :  { %v2810_v34 = vpop.eup %2809  ;;  %v1203_v37 = vmul.f32 %v2808_v32, %v1201_v12  ;;  %v1265_v12 = vld [vmem:[#allocation11 + $0x70] sm:$0xff] }
 0xed9   :  { %v3482_v57 = vsel %vm129_vm3, %v2806_v27, %v2810_v34  ;;  %v1263_v27 = vld [vmem:[#allocation11 + $0x60] sm:$0xff] }
 0xeda   :  { %v1204_v61 = vmul.f32 %v2808_v32, %v3482_v57  ;;  %v3519_v34 = vpack.c.bf16 %v1265_v12, %v1263_v27 }
 0xedc   :  { %1206 = vrot.lane.b32.xlu0 %v1204_v61, %s3104_s3 }
 0xee0   :  { %487 = vrot.lane.b32.xlu0 %v3355_v1, %s3104_s3  ;;  %v1255_v1 = vld [vmem:[#allocation11 + $0x20] sm:$0xff] }
 0xee1   :  { %v3498_v50 = vpack.c.bf16 %v1257_v49, %v1255_v1 }
 0xee3   :  { %2582 = vmatpush1.bf16.msra.mxu0 %v3498_v50 }
 0xee4   :  { %739 = vrot.lane.b32.xlu0 %v3417_v22, %s3104_s3  ;;  %v1245_v22 = vld [vmem:[#allocation9 + $0x50] sm:$0xff] }
 0xee5   :  { %v2569_v58 = vpack.c.bf16 %v1245_v22, %v1243_v63 }
 0xee7   :  { %2570 = vmatpush1.bf16.msra.mxu1 %v2569_v58 }
 0xee8   :  { %979 = vrot.lane.b32.xlu0 %v3453_v23, %s3104_s3  ;;  %v3507_v23 = vpack.c.bf16 %v1262_v4, %v1260_v59  ;;  %2572 = vmatprep.subr.bf16.mxu1 %v2571_v7 }
 0xeea   :  { %2584 = vmatprep.subr.bf16.mxu0 %v3507_v23 }
 0xeeb   :  { %2586 = vmatpush1.bf16.msra.mxu0 %v3509_v21  ;;  %2574 = vmatpush1.bf16.msra.mxu1 %v2573_v9 }
 0xeec   :  { %2588 = vmatprep.subr.bf16.mxu0 %v3517_v18  ;;  %2592 = vmatprep.subr.bf16.mxu1 %v3488_v24 }
 0xeef   :  { %2590 = vmatpush1.bf16.msra.mxu0 %v3519_v34 }
 0xef0   :  { %2608 = vmatprep.subr.bf16.mxu0 %v3488_v24 }
 0xef2   :  { %1426 = vmatmul.mubr.f32.vlgmr.msra.gmra.mrb[10].mxu0 %v3103_v0 }
 0xef3   :  { %2610 = vmatpush1.bf16.msra.mxu0 %v3490_v29  ;;  %1670 = vmatprep.mubr.f32.mxu0 %v3103_v0 }
 0xef4   :  { %2612 = vmatprep.subr.bf16.mxu0 %v3494_v47 }
 0xef7   :  { %2614 = vmatpush1.bf16.msra.mxu0 %v3498_v50 }
 0xef8   :  { %2616 = vmatprep.subr.bf16.mxu0 %v3507_v23 }
 0xefb   :  { %2618 = vmatpush1.bf16.msra.mxu0 %v3509_v21 }
 0xefc   :  { %2620 = vmatprep.subr.bf16.mxu0 %v3517_v18 }
 0xeff   :  { %2622 = vmatpush1.bf16.msra.mxu0 %v3519_v34 }
 0xf00   :  { %2640 = vmatprep.subr.bf16.mxu0 %v3488_v24 }
 0xf4e   :  { %v1207_v53 = vpop.permute.xlu0 %1206 }
 0xf4f   :  { %v3504_v11 = vadd.f32 %v1207_v53, %v1203_v37 }
 0xf51   :  { %2811 = vtanh.f32 %v3504_v11 }
 0xf52   :  { %v488_v5 = vpop.permute.xlu0 %487 }
 0xf53   :  { %491 = vst.msk [vmem:[#allocation2 - $0x5] sm:$0x40] %vm490_vm9, %v488_v5 }
 0xf54   :  { %493 = vst.msk [vmem:[#allocation2] sm:$0x40] %vm492_vm10, %v488_v5 }
 0xf55   :  { %1103 = vst.msk [vmem:[#allocation2 + $0x5] sm:$0x2] %vm3828_vm11, %v1100_v6  ;;  %vm3829_vm11 = vcmask 518402  }
 0xf56   :  { %1105 = vst.msk [vmem:[#allocation2] sm:$0x2] %vm3827_vm12, %v1100_v6  ;;  %v740_v32 = vpop.permute.xlu0 %739  ;;  %vm3830_vm12 = vcmask 256002  }
 0xf57   :  { %743 = vst.msk [vmem:[#allocation2 - $0x1] sm:$0x10] %vm742_vm13, %v740_v32 }
 0xf58   :  { %745 = vst.msk [vmem:[#allocation2] sm:$0x10] %vm744_vm14, %v740_v32 }
 0xf59   :  { %863 = vst.msk [vmem:[#allocation2 + $0x1] sm:$0x8] %vm862_vm15, %v860_v52 }
 0xf5a   :  { %865 = vst.msk [vmem:[#allocation2] sm:$0x8] %vm864_vm0, %v860_v52  ;;  %v980_v37 = vpop.permute.xlu0 %979 }
 0xf5b   :  { %v2812_v61 = vpop.eup %2811  ;;  %983 = vst.msk [vmem:[#allocation2 + $0x3] sm:$0x4] %vm3830_vm12, %v980_v37  ;;  %vm1218_vm12 = vcmask 516352  }
 0xf5c   :  { %985 = vst.msk [vmem:[#allocation2] sm:$0x4] %vm3829_vm11, %v980_v37  ;;  %v3533_v13 = vmul.f32 %v2812_v61, %v3482_v57  ;;  %vm1216_vm11 = vcmask 253952  }
 0xf5e   :  { %1213 = vrot.lane.b32.xlu0 %v3533_v13, %s3104_s3 }
 0xfc5   :  { %v1427_v15 = vpop.f32.mrb[10].mxu0 }
 0xfc6   :  { %v1429_v30 = vpop.f32.mrb[11].mxu0  ;;  %v1434_v31 = vrot.slane %v1427_v15, 1 }
 0xfc7   :  { %v1435_v36 = vrot.slane %v1429_v30, 1 }
 0xfd0   :  { %v1214_v57 = vpop.permute.xlu0 %1213 }
 0xfd1   :  { %1217 = vst.msk [vmem:[#allocation2 + $0x7] sm:$0x1] %vm1216_vm11, %v1214_v57  ;;  %1220 = vst.msk [vmem:[#allocation13] sm:$0x1] %vm1216_vm11, %v1214_v57 }
 0xfd2   :  { %1219 = vst.msk [vmem:[#allocation2] sm:$0x1] %vm1218_vm12, %v1214_v57 }
 0xfd9   :  { %v1234_v51 = vld [vmem:[#allocation2] sm:$0xff] }
 0xfda   :  { %2399 = vmatmul.mubr.msk.f32.vlgmr.msra.gmra.mrb[8].mxu1 %vm252_vm4, %v1234_v51 }
 0xfdb   :  { %2594 = vmatpush1.bf16.msra.mxu1 %v3490_v29  ;;  %1546 = vmatprep.mubr.f32.mxu1 %v3103_v0 }
 0xfdc   :  { %2596 = vmatprep.subr.bf16.mxu1 %v3494_v47 }
 0xfdf   :  { %2598 = vmatpush1.bf16.msra.mxu1 %v3498_v50 }
 0xfe0   :  { %2600 = vmatprep.subr.bf16.mxu1 %v3507_v23 }
 0xfe3   :  { %2602 = vmatpush1.bf16.msra.mxu1 %v3509_v21 }
 0xfe4   :  { %2604 = vmatprep.subr.bf16.mxu1 %v3517_v18 }
 0xfe7   :  { %2606 = vmatpush1.bf16.msra.mxu1 %v3519_v34 }
 0xfe8   :  { %2624 = vmatprep.subr.bf16.mxu1 %v3488_v24 }
0x10ad   :  { %v1348_v20 = vpop.f32.mrb[8].mxu1 }
0x10ae   :  { %v3566_v25 = vadd.f32 %v1348_v20, %v1272_v16  ;;  %v1350_v26 = vpop.f32.mrb[9].mxu1 }
0x10af   :  { %v3568_v28 = vadd.f32 %v1350_v26, %v1276_v19 }
0x10b0   :  { %v1355_v33 = vrot.slane %v3566_v25, 1  ;;  %v1471_v62 = vrot.slane %v3566_v25, 3 }
0x10b1   :  { %v1356_v38 = vrot.slane %v3568_v28, 1  ;;  %v1472_v6 = vrot.slane %v3568_v28, 3 }
0x10b2   :  { %v3575_v41 = vsel %vm3299_vm1, %v3566_v25, %v1355_v33  ;;  %v3606_v9 = vsel %vm3299_vm1, %v3566_v25, %v1471_v62 }
0x10b3   :  { %v1438_v39 = vadd.f32 %v1434_v31, %v3575_v41  ;;  %v3581_v40 = vsel %vm3304_vm2, %v3568_v28, %v1356_v38  ;;  %v3612_v27 = vsel %vm3304_vm2, %v3568_v28, %v1472_v6 }
0x10b4   :  { %v1439_v42 = vadd.f32 %v1435_v36, %v3581_v40 }
0x10b5   :  { %v2400_v43 = vmul.f32 -1.442695, %v1438_v39 }
0x10b6   :  { %v2401_v45 = vmul.f32 -1.442695, %v1439_v42 }
0x10b7   :  { %2813 = vpow2.f32 %v2400_v43 }
0x10b8   :  { %2815 = vpow2.f32 %v2401_v45  ;;  %v1595_v45 = vrot.slane %v3566_v25, 5 }
0x10b9   :  { %2817 = vtanh.f32 %v1439_v42 }
0x10c1   :  { %v2814_v1 = vpop.eup %2813 }
0x10c2   :  { %v2816_v49 = vpop.eup %2815  ;;  %v1446_v52 = vadd.f32 1.0, %v2814_v1  ;;  %v1596_v1 = vrot.slane %v3568_v28, 5 }
0x10c3   :  { %v1447_v53 = vadd.f32 1.0, %v2816_v49  ;;  %v2818_v55 = vpop.eup %2817 }
0x10c5   :  { %2819 = vrcp.f32 %v1447_v53 }
0x10c6   :  { %2821 = vrcp.f32 %v1446_v52 }
0x10cf   :  { %v2820_v60 = vpop.eup %2819 }
0x10d0   :  { %v2822_v14 = vpop.eup %2821  ;;  %v1455_v63 = vsel %vm129_vm3, %v2818_v55, %v2820_v60  ;;  %v3637_v55 = vsel %vm3299_vm1, %v3566_v25, %v1595_v45 }
0x10d1   :  { %v1457_v22 = vmul.f32 %v2822_v14, %v1455_v63  ;;  %v1456_v58 = vmul.f32 0.0, %v2822_v14 }
0x10d3   :  { %1459 = vrot.lane.b32.xlu1 %v1457_v22, %s3104_s3 }
0x1145   :  { %v1460_v59 = vpop.permute.xlu1 %1459 }
0x1146   :  { %v1462_v4 = vadd.f32 %v1460_v59, %v1456_v58 }
0x1148   :  { %2823 = vtanh.f32 %v1462_v4  ;;  %v1578_v35 = vrot.slane %v1462_v4, 1 }
0x1152   :  { %v2824_v2 = vpop.eup %2823 }
0x1153   :  { %v3587_v3 = vmul.f32 %v2824_v2, %v1455_v63  ;;  %v3643_v63 = vsel %vm3304_vm2, %v3568_v28, %v1596_v1 }
0x1155   :  { %v1477_v5 = vrot.slane %v3587_v3, 7 }
0x1157   :  { %1478 = vrot.lane.b32.xlu0 %v1477_v5, %s3104_s3 }
0x11c9   :  { %v1479_v44 = vpop.permute.xlu0 %1478 }
0x11ca   :  { %2402 = vmatmul.mubr.msk.f32.vlgmr.msra.gmra.mrb[10].mxu1 %vm252_vm4, %v1479_v44 }
0x11cb   :  { %2626 = vmatpush1.bf16.msra.mxu1 %v3490_v29  ;;  %1794 = vmatprep.mubr.f32.mxu1 %v3103_v0 }
0x11cc   :  { %2628 = vmatprep.subr.bf16.mxu1 %v3494_v47 }
0x11cf   :  { %2630 = vmatpush1.bf16.msra.mxu1 %v3498_v50 }
0x11d0   :  { %2632 = vmatprep.subr.bf16.mxu1 %v3507_v23 }
0x11d3   :  { %2634 = vmatpush1.bf16.msra.mxu1 %v3509_v21 }
0x11d4   :  { %2636 = vmatprep.subr.bf16.mxu1 %v3517_v18 }
0x11d7   :  { %2638 = vmatpush1.bf16.msra.mxu1 %v3519_v34 }
0x11d8   :  { %2656 = vmatprep.subr.bf16.mxu1 %v3488_v24 }
0x129d   :  { %v1548_v7 = vpop.f32.mrb[10].mxu1 }
0x129e   :  { %v1555_v48 = vrot.slane %v1548_v7, 2  ;;  %v1550_v8 = vpop.f32.mrb[11].mxu1 }
0x129f   :  { %v1556_v10 = vrot.slane %v1550_v8, 2 }
0x12a0   :  { %v1559_v17 = vadd.f32 %v1555_v48, %v3606_v9 }
0x12a1   :  { %v1560_v12 = vadd.f32 %v1556_v10, %v3612_v27 }
0x12a2   :  { %v2403_v32 = vmul.f32 -1.442695, %v1559_v17 }
0x12a3   :  { %v2404_v37 = vmul.f32 -1.442695, %v1560_v12 }
0x12a4   :  { %2825 = vpow2.f32 %v2403_v32 }
0x12a5   :  { %2827 = vpow2.f32 %v2404_v37 }
0x12a6   :  { %2829 = vtanh.f32 %v1560_v12 }
0x12ae   :  { %v2826_v61 = vpop.eup %2825 }
0x12af   :  { %v2828_v57 = vpop.eup %2827  ;;  %v1567_v51 = vadd.f32 1.0, %v2826_v61 }
0x12b0   :  { %v1568_v15 = vadd.f32 1.0, %v2828_v57  ;;  %v2830_v30 = vpop.eup %2829 }
0x12b1   :  { %2831 = vrcp.f32 %v1567_v51 }
0x12b2   :  { %2833 = vrcp.f32 %v1568_v15  ;;  %v1719_v15 = vrot.slane %v3566_v25, 7 }
0x12bb   :  { %v2832_v16 = vpop.eup %2831 }
0x12bc   :  { %v2834_v19 = vpop.eup %2833  ;;  %v1580_v20 = vmul.f32 %v2832_v16, %v1578_v35 }
0x12bd   :  { %v1576_v26 = vsel %vm129_vm3, %v2830_v30, %v2834_v19  ;;  %v1720_v30 = vrot.slane %v3568_v28, 7 }
0x12be   :  { %v1581_v31 = vmul.f32 %v2832_v16, %v1576_v26 }
0x12c0   :  { %1583 = vrot.lane.b32.xlu1 %v1581_v31, %s3104_s3 }
0x1332   :  { %v1584_v33 = vpop.permute.xlu1 %1583 }
0x1333   :  { %v1586_v36 = vadd.f32 %v1584_v33, %v1580_v20  ;;  %v3668_v20 = vsel %vm3299_vm1, %v3566_v25, %v1719_v15  ;;  %v3674_v33 = vsel %vm3304_vm2, %v3568_v28, %v1720_v30  ;;  %vm3835_vm1 = vcmask 254977  }
0x1334   :  { %vm3836_vm2 = vcmask 517377  }
0x1335   :  { %2835 = vtanh.f32 %v1586_v36  ;;  %v1702_v6 = vrot.slane %v1586_v36, 1 }
0x133f   :  { %v2836_v38 = vpop.eup %2835 }
0x1340   :  { %v3618_v39 = vmul.f32 %v2836_v38, %v1576_v26 }
0x1342   :  { %v1601_v42 = vrot.slane %v3618_v39, 6 }
0x1344   :  { %1602 = vrot.lane.b32.xlu0 %v1601_v42, %s3104_s3 }
0x13b6   :  { %v1603_v43 = vpop.permute.xlu0 %1602 }
0x13b7   :  { %2405 = vmatmul.mubr.msk.f32.vlgmr.msra.gmra.mrb[12].mxu0 %vm252_vm4, %v1603_v43 }
0x13b8   :  { %2642 = vmatpush1.bf16.msra.mxu0 %v3490_v29  ;;  %1912 = vmatprep.mubr.f32.mxu0 %v3103_v0 }
0x13b9   :  { %2644 = vmatprep.subr.bf16.mxu0 %v3494_v47 }
0x13bc   :  { %2646 = vmatpush1.bf16.msra.mxu0 %v3498_v50 }
0x13bd   :  { %2648 = vmatprep.subr.bf16.mxu0 %v3507_v23 }
0x13c0   :  { %2650 = vmatpush1.bf16.msra.mxu0 %v3509_v21 }
0x13c1   :  { %2652 = vmatprep.subr.bf16.mxu0 %v3517_v18 }
0x13c4   :  { %2654 = vmatpush1.bf16.msra.mxu0 %v3519_v34 }
0x13c5   :  { %2672 = vmatprep.subr.bf16.mxu0 %v3488_v24 }
0x148a   :  { %v1672_v49 = vpop.f32.mrb[12].mxu0 }
0x148b   :  { %v1679_v52 = vrot.slane %v1672_v49, 3  ;;  %v1674_v53 = vpop.f32.mrb[13].mxu0 }
0x148c   :  { %v1680_v60 = vrot.slane %v1674_v53, 3 }
0x148d   :  { %v1683_v14 = vadd.f32 %v1679_v52, %v3637_v55 }
0x148e   :  { %v1684_v22 = vadd.f32 %v1680_v60, %v3643_v63 }
0x148f   :  { %v2406_v58 = vmul.f32 -1.442695, %v1683_v14 }
0x1490   :  { %v2407_v59 = vmul.f32 -1.442695, %v1684_v22 }
0x1491   :  { %2837 = vpow2.f32 %v2406_v58 }
0x1492   :  { %2839 = vpow2.f32 %v2407_v59 }
0x1493   :  { %2841 = vtanh.f32 %v1684_v22 }
0x149b   :  { %v2838_v4 = vpop.eup %2837 }
0x149c   :  { %v2840_v2 = vpop.eup %2839  ;;  %v1691_v5 = vadd.f32 1.0, %v2838_v4 }
0x149d   :  { %v1692_v44 = vadd.f32 1.0, %v2840_v2  ;;  %v2842_v62 = vpop.eup %2841 }
0x149e   :  { %2843 = vrcp.f32 %v1691_v5 }
0x149f   :  { %2845 = vrcp.f32 %v1692_v44 }
0x14a8   :  { %v2844_v7 = vpop.eup %2843 }
0x14a9   :  { %v2846_v48 = vpop.eup %2845  ;;  %v1704_v8 = vmul.f32 %v2844_v7, %v1702_v6 }
0x14aa   :  { %v1700_v10 = vsel %vm129_vm3, %v2842_v62, %v2846_v48 }
0x14ab   :  { %v1705_v17 = vmul.f32 %v2844_v7, %v1700_v10 }
0x14ad   :  { %1707 = vrot.lane.b32.xlu1 %v1705_v17, %s3104_s3 }
0x151f   :  { %v1708_v12 = vpop.permute.xlu1 %1707 }
0x1520   :  { %v1710_v32 = vadd.f32 %v1708_v12, %v1704_v8 }
0x1522   :  { %2847 = vtanh.f32 %v1710_v32  ;;  %v1826_v1 = vrot.slane %v1710_v32, 1 }
0x152c   :  { %v2848_v37 = vpop.eup %2847 }
0x152d   :  { %v3649_v61 = vmul.f32 %v2848_v37, %v1700_v10 }
0x152f   :  { %v1725_v57 = vrot.slane %v3649_v61, 5 }
0x1531   :  { %1726 = vrot.lane.b32.xlu0 %v1725_v57, %s3104_s3 }
0x15a3   :  { %v1727_v51 = vpop.permute.xlu0 %1726 }
0x15a4   :  { %2408 = vmatmul.mubr.msk.f32.vlgmr.msra.gmra.mrb[12].mxu1 %vm252_vm4, %v1727_v51 }
0x15a5   :  { %2658 = vmatpush1.bf16.msra.mxu1 %v3490_v29  ;;  %2030 = vmatprep.mubr.f32.mxu1 %v3103_v0 }
0x15a6   :  { %2660 = vmatprep.subr.bf16.mxu1 %v3494_v47 }
0x15a9   :  { %2662 = vmatpush1.bf16.msra.mxu1 %v3498_v50 }
0x15aa   :  { %2664 = vmatprep.subr.bf16.mxu1 %v3507_v23 }
0x15ad   :  { %2666 = vmatpush1.bf16.msra.mxu1 %v3509_v21 }
0x15ae   :  { %2668 = vmatprep.subr.bf16.mxu1 %v3517_v18 }
0x15b1   :  { %2670 = vmatpush1.bf16.msra.mxu1 %v3519_v34 }
0x15b2   :  { %2688 = vmatprep.subr.bf16.mxu1 %v3488_v24 }
0x1677   :  { %v1796_v35 = vpop.f32.mrb[12].mxu1 }
0x1678   :  { %v1803_v16 = vrot.slane %v1796_v35, 4  ;;  %v1798_v19 = vpop.f32.mrb[13].mxu1 }
0x1679   :  { %v1804_v26 = vrot.slane %v1798_v19, 4 }
0x167a   :  { %v1807_v31 = vadd.f32 %v1803_v16, %v3668_v20 }
0x167b   :  { %v1808_v24 = vadd.f32 %v1804_v26, %v3674_v33 }
0x167c   :  { %v2409_v36 = vmul.f32 -1.442695, %v1807_v31 }
0x167d   :  { %v2410_v38 = vmul.f32 -1.442695, %v1808_v24 }
0x167e   :  { %2849 = vpow2.f32 %v2409_v36 }
0x167f   :  { %2851 = vpow2.f32 %v2410_v38 }
0x1680   :  { %2853 = vtanh.f32 %v1808_v24 }
0x1688   :  { %v2850_v42 = vpop.eup %2849 }
0x1689   :  { %v2852_v43 = vpop.eup %2851  ;;  %v1815_v45 = vadd.f32 1.0, %v2850_v42 }
0x168a   :  { %v1816_v54 = vadd.f32 1.0, %v2852_v43  ;;  %v2854_v25 = vpop.eup %2853 }
0x168b   :  { %2855 = vrcp.f32 %v1815_v45 }
0x168c   :  { %2857 = vrcp.f32 %v1816_v54 }
0x1695   :  { %v2856_v49 = vpop.eup %2855 }
0x1696   :  { %v2858_v52 = vpop.eup %2857  ;;  %v1828_v56 = vmul.f32 %v2856_v49, %v1826_v1 }
0x1697   :  { %v1824_v28 = vsel %vm129_vm3, %v2854_v25, %v2858_v52 }
0x1698   :  { %v1829_v53 = vmul.f32 %v2856_v49, %v1824_v28 }
0x169a   :  { %1831 = vrot.lane.b32.xlu1 %v1829_v53, %s3104_s3 }
0x170c   :  { %v1832_v60 = vpop.permute.xlu1 %1831 }
0x170d   :  { %v1834_v14 = vadd.f32 %v1832_v60, %v1828_v56 }
0x170f   :  { %2859 = vtanh.f32 %v1834_v14  ;;  %v1944_v57 = vrot.slane %v1834_v14, 1 }
0x1719   :  { %v2860_v22 = vpop.eup %2859 }
0x171a   :  { %v3680_v58 = vmul.f32 %v2860_v22, %v1824_v28 }
0x171c   :  { %v1843_v59 = vrot.slane %v3680_v58, 4 }
0x171e   :  { %1844 = vrot.lane.b32.xlu0 %v1843_v59, %s3104_s3 }
0x1790   :  { %v1845_v4 = vpop.permute.xlu0 %1844 }
0x1791   :  { %2411 = vmatmul.mubr.msk.f32.vlgmr.msra.gmra.mrb[14].mxu0 %vm252_vm4, %v1845_v4 }
0x1792   :  { %2674 = vmatpush1.bf16.msra.mxu0 %v3490_v29  ;;  %2148 = vmatprep.mubr.f32.mxu0 %v3103_v0 }
0x1793   :  { %2676 = vmatprep.subr.bf16.mxu0 %v3494_v47 }
0x1796   :  { %2678 = vmatpush1.bf16.msra.mxu0 %v3498_v50 }
0x1797   :  { %2680 = vmatprep.subr.bf16.mxu0 %v3507_v23 }
0x179a   :  { %2682 = vmatpush1.bf16.msra.mxu0 %v3509_v21 }
0x179b   :  { %2684 = vmatprep.subr.bf16.mxu0 %v3517_v18 }
0x179e   :  { %2686 = vmatpush1.bf16.msra.mxu0 %v3519_v34 }
0x1864   :  { %v1914_v2 = vpop.f32.mrb[14].mxu0 }
0x1865   :  { %v1921_v5 = vrot.slane %v1914_v2, 5  ;;  %v1916_v44 = vpop.f32.mrb[15].mxu0 }
0x1866   :  { %v1922_v62 = vrot.slane %v1916_v44, 5 }
0x1867   :  { %v1925_v6 = vadd.f32 %v1921_v5, %v3575_v41 }
0x1868   :  { %v1926_v7 = vadd.f32 %v1922_v62, %v3581_v40 }
0x1869   :  { %v2412_v48 = vmul.f32 -1.442695, %v1925_v6 }
0x186a   :  { %v2413_v8 = vmul.f32 -1.442695, %v1926_v7 }
0x186b   :  { %2861 = vpow2.f32 %v2412_v48 }
0x186c   :  { %2863 = vpow2.f32 %v2413_v8 }
0x186d   :  { %2865 = vtanh.f32 %v1926_v7 }
0x1875   :  { %v2862_v10 = vpop.eup %2861 }
0x1876   :  { %v2864_v17 = vpop.eup %2863  ;;  %v1933_v12 = vadd.f32 1.0, %v2862_v10 }
0x1877   :  { %v1934_v32 = vadd.f32 1.0, %v2864_v17  ;;  %v2866_v37 = vpop.eup %2865 }
0x1878   :  { %2867 = vrcp.f32 %v1933_v12 }
0x1879   :  { %2869 = vrcp.f32 %v1934_v32 }
0x1882   :  { %v2868_v51 = vpop.eup %2867 }
0x1883   :  { %v2870_v15 = vpop.eup %2869  ;;  %v1946_v30 = vmul.f32 %v2868_v51, %v1944_v57 }
0x1884   :  { %v1942_v41 = vsel %vm129_vm3, %v2866_v37, %v2870_v15 }
0x1885   :  { %v1947_v40 = vmul.f32 %v2868_v51, %v1942_v41 }
0x1887   :  { %1949 = vrot.lane.b32.xlu1 %v1947_v40, %s3104_s3 }
0x18f9   :  { %v1950_v35 = vpop.permute.xlu1 %1949 }
0x18fa   :  { %v1952_v16 = vadd.f32 %v1950_v35, %v1946_v30 }
0x18fc   :  { %2871 = vtanh.f32 %v1952_v16 }
0x1906   :  { %v2872_v19 = vpop.eup %2871 }
0x1907   :  { %v3698_v26 = vmul.f32 %v2872_v19, %v1942_v41 }
0x1909   :  { %v1961_v31 = vrot.slane %v3698_v26, 3 }
0x190b   :  { %1962 = vrot.lane.b32.xlu0 %v1961_v31, %s3104_s3 }
0x197d   :  { %v1963_v24 = vpop.permute.xlu0 %1962 }
0x197e   :  { %2414 = vmatmul.mubr.msk.f32.vlgmr.msra.gmra.mrb[14].mxu1 %vm252_vm4, %v1963_v24 }
0x197f   :  { %2690 = vmatpush1.bf16.msra.mxu1 %v3490_v29  ;;  %2266 = vmatprep.mubr.f32.mxu1 %v3103_v0 }
0x1980   :  { %2692 = vmatprep.subr.bf16.mxu1 %v3494_v47 }
0x1983   :  { %2694 = vmatpush1.bf16.msra.mxu1 %v3498_v50 }
0x1984   :  { %2696 = vmatprep.subr.bf16.mxu1 %v3507_v23 }
0x1987   :  { %2698 = vmatpush1.bf16.msra.mxu1 %v3509_v21 }
0x1988   :  { %2700 = vmatprep.subr.bf16.mxu1 %v3517_v18 }
0x198b   :  { %2702 = vmatpush1.bf16.msra.mxu1 %v3519_v34  ;;  %v2062_v34 = vrot.slane %v1952_v16, 1 }
0x1a51   :  { %v2032_v36 = vpop.f32.mrb[14].mxu1 }
0x1a52   :  { %v2039_v38 = vrot.slane %v2032_v36, 6  ;;  %v2034_v42 = vpop.f32.mrb[15].mxu1 }
0x1a53   :  { %v2040_v43 = vrot.slane %v2034_v42, 6 }
0x1a54   :  { %v2043_v29 = vadd.f32 %v2039_v38, %v3606_v9 }
0x1a55   :  { %v2044_v0 = vadd.f32 %v2040_v43, %v3612_v27 }
0x1a56   :  { %v2415_v45 = vmul.f32 -1.442695, %v2043_v29 }
0x1a57   :  { %v2416_v47 = vmul.f32 -1.442695, %v2044_v0 }
0x1a58   :  { %2873 = vpow2.f32 %v2415_v45 }
0x1a59   :  { %2875 = vpow2.f32 %v2416_v47 }
0x1a5a   :  { %2877 = vtanh.f32 %v2044_v0 }
0x1a62   :  { %v2874_v50 = vpop.eup %2873 }
0x1a63   :  { %v2876_v23 = vpop.eup %2875  ;;  %v2051_v54 = vadd.f32 1.0, %v2874_v50 }
0x1a64   :  { %v2052_v21 = vadd.f32 1.0, %v2876_v23  ;;  %v2878_v18 = vpop.eup %2877 }
0x1a65   :  { %2879 = vrcp.f32 %v2051_v54 }
0x1a66   :  { %2881 = vrcp.f32 %v2052_v21 }
0x1a6f   :  { %v2880_v25 = vpop.eup %2879 }
0x1a70   :  { %v2882_v1 = vpop.eup %2881  ;;  %v2064_v49 = vmul.f32 %v2880_v25, %v2062_v34 }
0x1a71   :  { %v2060_v9 = vsel %vm129_vm3, %v2878_v18, %v2882_v1 }
0x1a72   :  { %v2065_v27 = vmul.f32 %v2880_v25, %v2060_v9 }
0x1a74   :  { %2067 = vrot.lane.b32.xlu1 %v2065_v27, %s3104_s3 }
0x1ae6   :  { %v2068_v52 = vpop.permute.xlu1 %2067 }
0x1ae7   :  { %v2070_v56 = vadd.f32 %v2068_v52, %v2064_v49 }
0x1ae9   :  { %2883 = vtanh.f32 %v2070_v56  ;;  %v2180_v12 = vrot.slane %v2070_v56, 1 }
0x1af3   :  { %v2884_v28 = vpop.eup %2883 }
0x1af4   :  { %v3716_v53 = vmul.f32 %v2884_v28, %v2060_v9 }
0x1af6   :  { %v2079_v60 = vrot.slane %v3716_v53, 2 }
0x1af8   :  { %2080 = vrot.lane.b32.xlu0 %v2079_v60, %s3104_s3 }
0x1b6a   :  { %v2081_v14 = vpop.permute.xlu0 %2080 }
0x1b6b   :  { %2417 = vmatmul.mubr.msk.f32.vlgmr.msra.gmra.mrb[16].mxu0 %vm252_vm4, %v2081_v14 }
0x1c3e   :  { %v2150_v22 = vpop.f32.mrb[16].mxu0 }
0x1c3f   :  { %v2157_v59 = vrot.slane %v2150_v22, 7  ;;  %v2152_v4 = vpop.f32.mrb[17].mxu0 }
0x1c40   :  { %v2158_v2 = vrot.slane %v2152_v4, 7 }
0x1c41   :  { %v2161_v5 = vadd.f32 %v2157_v59, %v3637_v55 }
0x1c42   :  { %v2162_v44 = vadd.f32 %v2158_v2, %v3643_v63 }
0x1c43   :  { %v2418_v62 = vmul.f32 -1.442695, %v2161_v5 }
0x1c44   :  { %v2419_v6 = vmul.f32 -1.442695, %v2162_v44 }
0x1c45   :  { %2885 = vpow2.f32 %v2418_v62 }
0x1c46   :  { %2887 = vpow2.f32 %v2419_v6 }
0x1c47   :  { %2889 = vtanh.f32 %v2162_v44 }
0x1c4f   :  { %v2886_v7 = vpop.eup %2885 }
0x1c50   :  { %v2888_v48 = vpop.eup %2887  ;;  %v2169_v8 = vadd.f32 1.0, %v2886_v7 }
0x1c51   :  { %v2170_v10 = vadd.f32 1.0, %v2888_v48  ;;  %v2890_v17 = vpop.eup %2889 }
0x1c52   :  { %2891 = vrcp.f32 %v2169_v8 }
0x1c53   :  { %2893 = vrcp.f32 %v2170_v10 }
0x1c5c   :  { %v2892_v32 = vpop.eup %2891 }
0x1c5d   :  { %v2894_v37 = vpop.eup %2893  ;;  %v2182_v57 = vmul.f32 %v2892_v32, %v2180_v12 }
0x1c5e   :  { %v2178_v55 = vsel %vm129_vm3, %v2890_v17, %v2894_v37 }
0x1c5f   :  { %v2183_v63 = vmul.f32 %v2892_v32, %v2178_v55 }
0x1c61   :  { %2185 = vrot.lane.b32.xlu1 %v2183_v63, %s3104_s3 }
0x1cd3   :  { %v2186_v51 = vpop.permute.xlu1 %2185 }
0x1cd4   :  { %v2188_v15 = vadd.f32 %v2186_v51, %v2182_v57 }
0x1cd6   :  { %2895 = vtanh.f32 %v2188_v15  ;;  %v2292_v23 = vrot.slane %v2188_v15, 1 }
0x1ce0   :  { %v2896_v30 = vpop.eup %2895 }
0x1ce1   :  { %v2190_v41 = vmul.f32 %v2896_v30, %v2178_v55 }
0x1ce3   :  { %v2197_v40 = vrot.slane %v2190_v41, 1 }
0x1ce5   :  { %2198 = vrot.lane.b32.xlu0 %v2197_v40, %s3104_s3 }
0x1ce9   :  { %1466 = vrot.lane.b32.xlu0 %v3587_v3, %s3104_s3 }
0x1ced   :  { %1714 = vrot.lane.b32.xlu0 %v3649_v61, %s3104_s3 }
0x1cf1   :  { %1956 = vrot.lane.b32.xlu0 %v3698_v26, %s3104_s3 }
0x1cf5   :  { %2192 = vrot.lane.b32.xlu0 %v2190_v41, %s3104_s3 }
0x1cf9   :  { %1230 = vrot.lane.b32.xlu0 %v3504_v11, %s3105_s6 }
0x1d57   :  { %v2199_v35 = vpop.permute.xlu0 %2198 }
0x1d58   :  { %2420 = vmatmul.mubr.msk.f32.vlgmr.msra.gmra.mrb[16].mxu1 %vm252_vm4, %v2199_v35  ;;  %vm3838_vm4 = vcmask 518402  }
0x1d5b   :  { %v1467_v16 = vpop.permute.xlu0 %1466 }
0x1d5c   :  { %1469 = vst.msk [vmem:[#allocation2 - $0x7] sm:$0x80] %vm364_vm5, %v1467_v16 }
0x1d5d   :  { %1470 = vst.msk [vmem:[#allocation2] sm:$0x80] %vm366_vm6, %v1467_v16 }
0x1d5f   :  { %v1715_v3 = vpop.permute.xlu0 %1714 }
0x1d60   :  { %1717 = vst.msk [vmem:[#allocation2 - $0x3] sm:$0x20] %vm616_vm7, %v1715_v3 }
0x1d61   :  { %1718 = vst.msk [vmem:[#allocation2] sm:$0x20] %vm618_vm8, %v1715_v3 }
0x1d63   :  { %v1957_v61 = vpop.permute.xlu0 %1956 }
0x1d67   :  { %v2193_v19 = vpop.permute.xlu0 %2192 }
0x1d6b   :  { %v1231_v26 = vpop.permute.xlu0 %1230 }
0x1d6c   :  { %1233 = vst.msk [vmem:[#allocation15 + $0x1] sm:$0x1] %vm1216_vm11, %v1231_v26 }
0x1e2b   :  { %v2268_v31 = vpop.f32.mrb[16].mxu1 }
0x1e2c   :  { %v2273_v24 = vadd.f32 %v2268_v31, %v3668_v20  ;;  %v2270_v36 = vpop.f32.mrb[17].mxu1 }
0x1e2d   :  { %v2274_v38 = vadd.f32 %v2270_v36, %v3674_v33 }
0x1e2e   :  { %v2421_v42 = vmul.f32 -1.442695, %v2273_v24 }
0x1e2f   :  { %v2422_v43 = vmul.f32 -1.442695, %v2274_v38 }
0x1e30   :  { %2897 = vpow2.f32 %v2421_v42 }
0x1e31   :  { %2899 = vpow2.f32 %v2422_v43 }
0x1e32   :  { %2901 = vtanh.f32 %v2274_v38 }
0x1e3a   :  { %v2898_v29 = vpop.eup %2897 }
0x1e3b   :  { %v2900_v0 = vpop.eup %2899  ;;  %v2281_v45 = vadd.f32 1.0, %v2898_v29 }
0x1e3c   :  { %v2282_v47 = vadd.f32 1.0, %v2900_v0  ;;  %v2902_v50 = vpop.eup %2901 }
0x1e3d   :  { %2903 = vrcp.f32 %v2281_v45 }
0x1e3e   :  { %2905 = vrcp.f32 %v2282_v47 }
0x1e47   :  { %v2904_v54 = vpop.eup %2903 }
0x1e48   :  { %v2906_v21 = vpop.eup %2905  ;;  %v2294_v18 = vmul.f32 %v2904_v54, %v2292_v23 }
0x1e49   :  { %v2290_v20 = vsel %vm129_vm3, %v2902_v50, %v2906_v21  ;;  %vm3837_vm3 = vcmask 256002  }
0x1e4a   :  { %v2295_v33 = vmul.f32 %v2904_v54, %v2290_v20 }
0x1e4c   :  { %2297 = vrot.lane.b32.xlu1 %v2295_v33, %s3104_s3 }
0x1e50   :  { %1590 = vrot.lane.b32.xlu1 %v3618_v39, %s3104_s3 }
0x1e54   :  { %1838 = vrot.lane.b32.xlu1 %v3680_v58, %s3104_s3 }
0x1e58   :  { %2074 = vrot.lane.b32.xlu1 %v3716_v53, %s3104_s3 }
0x1ebe   :  { %v2298_v34 = vpop.permute.xlu1 %2297 }
0x1ebf   :  { %v2300_v25 = vadd.f32 %v2298_v34, %v2294_v18 }
0x1ec1   :  { %2907 = vtanh.f32 %v2300_v25 }
0x1ec2   :  { %v1591_v1 = vpop.permute.xlu1 %1590 }
0x1ec3   :  { %1593 = vst.msk [vmem:[#allocation2 - $0x5] sm:$0x40] %vm490_vm9, %v1591_v1 }
0x1ec4   :  { %1594 = vst.msk [vmem:[#allocation2] sm:$0x40] %vm492_vm10, %v1591_v1 }
0x1ec5   :  { %2195 = vst.msk [vmem:[#allocation2 + $0x5] sm:$0x2] %vm3835_vm1, %v2193_v19 }
0x1ec6   :  { %2196 = vst.msk [vmem:[#allocation2] sm:$0x2] %vm3836_vm2, %v2193_v19  ;;  %v1839_v46 = vpop.permute.xlu1 %1838 }
0x1ec7   :  { %1841 = vst.msk [vmem:[#allocation2 - $0x1] sm:$0x10] %vm742_vm13, %v1839_v46 }
0x1ec8   :  { %1842 = vst.msk [vmem:[#allocation2] sm:$0x10] %vm744_vm14, %v1839_v46 }
0x1ec9   :  { %1959 = vst.msk [vmem:[#allocation2 + $0x1] sm:$0x8] %vm862_vm15, %v1957_v61 }
0x1eca   :  { %1960 = vst.msk [vmem:[#allocation2] sm:$0x8] %vm864_vm0, %v1957_v61  ;;  %v2075_v39 = vpop.permute.xlu1 %2074 }
0x1ecb   :  { %v2908_v58 = vpop.eup %2907  ;;  %2077 = vst.msk [vmem:[#allocation2 + $0x3] sm:$0x4] %vm3837_vm3, %v2075_v39 }
0x1ecc   :  { %2078 = vst.msk [vmem:[#allocation2] sm:$0x4] %vm3838_vm4, %v2075_v39  ;;  %v2302_v49 = vmul.f32 %v2908_v58, %v2290_v20 }
0x1ece   :  { %2310 = vrot.lane.b32.xlu0 %v2302_v49, %s3105_s6  ;;  %2304 = vrot.lane.b32.xlu1 %v2302_v49, %s3104_s3 }
0x1ed2   :  { %1221 = vrot.lane.b32.xlu1 %v3533_v13, %s3105_s6 }
0x1ed6   :  { %1226 = vrot.lane.b32.xlu1 %v3504_v11, %s3104_s3 }
0x1eda   :  { %2315 = vrot.lane.b32.xlu1 %v2300_v25, %s3104_s3 }
0x1f40   :  { %v2305_v9 = vpop.permute.xlu1 %2304  ;;  %v2311_v27 = vpop.permute.xlu0 %2310 }
0x1f41   :  { %2307 = vst.msk [vmem:[#allocation2 + $0x7] sm:$0x1] %vm1216_vm11, %v2305_v9  ;;  %2309 = vst.msk [vmem:[#allocation13 + $0x2] sm:$0x1] %vm1216_vm11, %v2305_v9 }
0x1f42   :  { %2308 = vst.msk [vmem:[#allocation2] sm:$0x1] %vm1218_vm12, %v2305_v9 }
0x1f43   :  { %2313 = vst.msk [vmem:[#allocation13 + $0x3] sm:$0x1] %vm1216_vm11, %v2311_v27 }
0x1f44   :  { %v1222_v52 = vpop.permute.xlu1 %1221 }
0x1f45   :  { %1224 = vst.msk [vmem:[#allocation13 + $0x1] sm:$0x1] %vm1216_vm11, %v1222_v52 }
0x1f46   :  { %3031 = shalt.err (!%p3028_p2)
}
0x1f47   :  { %s3032_s1 = scalar_lea.hbm %s3824_s8, 64 }
0x1f48   :  { %p3033_p3 = scmp.ne.s32.totalorder %s3824_s8, %s3032_s1  ;;  %p3036_p4 = scmp.lt.u32.totalorder %s3032_s1, %s3824_s8 }
0x1f4a   :  { %p3038_p5 = pnand %p3036_p4, %p3033_p3 }
0x1f4c   :  { %3041 = shalt.err (!%p3038_p5)
}
0x1f4d   :  { %2350 = dma.vmem_to_hbm [thread:$0]  %s2348_s30, 64, %s3824_s8, [#allocation14]   ;;  %v1227_v11 = vpop.permute.xlu1 %1226  ;;  %v2323_v13 = vld [vmem:[#allocation2] sm:$0xff]  ;;  %v2909_v60 = vld [vmem:[#allocation3] sm:$0xff]  ;;  %vm3839_vm0 = vcmask 261120  }
0x1f4e   :  { %1229 = vst.msk [vmem:[#allocation15] sm:$0x1] %vm1216_vm11, %v1227_v11  ;;  %s3107_s17 = smov 96   ;;  %s3108_s18 = smov [#allocation12]  }
0x1f4f   :  { %2325 = vrot.lane.b32.xlu0 %v2323_v13, %s3107_s17  ;;  %s2337_s21 = sshll.u32 %s3108_s18, 4  ;;  %s3109_s22 = smov [#allocation15]   ;;  %s2338_s21 = int_to_ptr.vmem [resolvable:$true] %s2337_s21 }
0x1f50   :  { %s2357_s23 = sshll.u32 %s3109_s22, 4  ;;  %s3042_s8 = scalar_lea.vmem %s2338_s21, 128  ;;  %s2358_s23 = int_to_ptr.vmem [resolvable:$true] %s2357_s23 }
0x1f51   :  { %v2316_v56 = vpop.permute.xlu1 %2315  ;;  %p3043_p6 = scmp.ne.s32.totalorder %s2338_s21, %s3042_s8  ;;  %p3047_p7 = scmp.lt.s32.totalorder %s2338_s21, %s2338_s21 }
0x1f52   :  { %2318 = vst.msk [vmem:[#allocation15 + $0x2] sm:$0x1] %vm1216_vm11, %v2316_v56  ;;  %p3048_p8 = scmp.lt.s32.totalorder %s3042_s8, %s3042_s8 }
0x1f53   :  { %2319 = vrot.lane.b32.xlu0 %v2300_v25, %s3105_s6 }
0x1f54   :  { %p3049_p9 = por %p3048_p8, %p3047_p7 }
0x1f56   :  { %p3050_p10 = pnand %p3049_p9, %p3043_p6 }
0x1fc1   :  { %v2326_v28 = vpop.permute.xlu0 %2325 }
0x1fc2   :  { %v2328_v53 = vadd.f32 %v2326_v28, %v2323_v13 }
0x1fc4   :  { %v2329_v14 = vadd.f32 %v2909_v60, %v2328_v53 }
0x1fc5   :  { %v2320_v22 = vpop.permute.xlu0 %2319 }
0x1fc6   :  { %2330 = vst.msk [vmem:[#allocation12] sm:$0xff] %vm3839_vm0, %v2329_v14 }
0x1fc7   :  { %2322 = vst.msk [vmem:[#allocation15 + $0x3] sm:$0x1] %vm1216_vm11, %v2320_v22 }
0x1fc8   :  { %3053 = shalt.err (!%p3050_p10)
}
0x1fc9   :  { %s3054_s24 = scalar_lea.hbm %s3823_s7, 128 }
0x1fca   :  { %p3055_p11 = scmp.ne.s32.totalorder %s3823_s7, %s3054_s24  ;;  %p3058_p12 = scmp.lt.u32.totalorder %s3054_s24, %s3823_s7 }
0x1fcc   :  { %p3060_p13 = pnand %p3058_p12, %p3055_p11 }
0x1fce   :  { %3063 = shalt.err (!%p3060_p13)
}
0x1fcf   :  { %2340 = dma.vmem_to_hbm [thread:$0]  %s2338_s21, 128, %s3823_s7, [#allocation5]  }
0x1fd0   :  { %s3064_s28 = scalar_lea.vmem %s2358_s23, 64  ;;  %p3069_p1 = scmp.lt.s32.totalorder %s2358_s23, %s2358_s23 }
0x1fd1   :  { %p3065_p0 = scmp.ne.s32.totalorder %s2358_s23, %s3064_s28  ;;  %p3070_p2 = scmp.lt.s32.totalorder %s3064_s28, %s3064_s28 }
0x1fd3   :  { %p3071_p3 = por %p3070_p2, %p3069_p1 }
0x1fd5   :  { %p3072_p4 = pnand %p3071_p3, %p3065_p0 }
0x1fd7   :  { %3075 = shalt.err (!%p3072_p4)
}
0x1fd8   :  { %s3076_s30 = scalar_lea.hbm %s3825_s9, 64 }
0x1fd9   :  { %p3077_p5 = scmp.ne.s32.totalorder %s3825_s9, %s3076_s30  ;;  %p3080_p6 = scmp.lt.u32.totalorder %s3076_s30, %s3825_s9 }
0x1fdb   :  { %p3082_p7 = pnand %p3080_p6, %p3077_p5 }
0x1fdd   :  { %3085 = shalt.err (!%p3082_p7)
}
0x1fde   :  { %2360 = dma.vmem_to_hbm [thread:$0]  %s2358_s23, 64, %s3825_s9, [#allocation14]  }
0x1fdf   :  { %3092 = dma.done.wait [#allocation5], 128  }
0x1fe0   :  { %3093 = vsyncadd [#allocation5], 4294967168 }
0x1fe1   :  { %3094 = dma.done.wait [#allocation14], 128  }
0x1fe2   :  { %3095 = vsyncadd [#allocation14], 4294967168 }
0x1fe3   :  { %2370 = vsyncpa [#allocation4], 1 }
0x1fe4   :  { %2371 = vsyncpa [#allocation7], 1 }
0x1fe5   :  { %2372 = vsyncpa [#allocation10], 1 }
0x1fe6   :  { %2373 = vsyncpa [#allocation5], 1 }
0x1fe7   :  { %2374 = vsyncpa [#allocation14], 1 }

</bundles_post_ra>
